<compile_context>
chip_gen: v6e
topology: v6e:2x2x1
jax: 0.10.0
libtpu: 0.0.40
codegen_flags: <defaults>
</compile_context>

<pallas_src>
import jax
import jax.numpy as jnp
from jax import lax
from jax.experimental import pallas as pl
from jax.experimental.pallas import tpu as pltpu

# ---------------- problem sizes (small, consistent with the module) ----------
B = 2          # batch
T = 64         # number of query points per batch element
D_IN = 3       # input_dim (3D points)
L_DIM = 8      # latent_dim
H = 32         # size_hidden
N = B * T      # flattened rows (= lane axis inside the kernel)
EPS = 1e-5     # nn.BatchNorm1d default eps
N_BLOCKS = 5
N_CBN = 2 * N_BLOCKS + 1     # 2 CBatchNorms per block + final bn
N_FC = 2 * N_BLOCKS          # fc_0 / fc_1 per block

K_TOP = D_IN + L_DIM + 1     # fused operand rows: [p ; c ; ones]
M_TOP = H + 2 * N_CBN * H    # fused result rows: [fc_p ; (gamma,beta) x N_CBN]


# ---------------- Pallas kernel ----------------------------------------------
def decoder_kernel(x_top_ref, w_top_ref, fcw_ref, fcb_ref, wo_bo_ref,
                   out_ref, top_ref):
    f32 = jnp.float32

    def mm(a, b):
        # f32 operands, f32 accumulation. Latency-bound at K in {12, 32};
        # bf16 operand casts would only add VPU passes on the critical path.
        return jnp.dot(a, b, preferred_element_type=f32)

    # Fused top matmul: fc_p AND all N_CBN gamma/beta 1x1 convs AND all of
    # their biases (ones-row trick) in one (M_TOP, K_TOP) @ (K_TOP, N) dot.
    #   rows [0, H)                          -> fc_p(p) + bp
    #   rows [H + 2k*H, H + 2k*H + H)        -> gamma_k
    #   rows [H + (2k+1)*H, H + (2k+2)*H)    -> beta_k
    top_ref[...] = mm(w_top_ref[...], x_top_ref[...])          # (M_TOP, N)

    def cbn_relu(h, idx):
        # CBatchNorm (training-mode batch stats over the N lanes) + ReLU.
        # idx is a Python int -> static, zero-cost sublane slices of top_ref.
        g0 = H + 2 * idx * H
        gamma = top_ref[pl.ds(g0, H), :]                        # (H, N)
        beta = top_ref[pl.ds(g0 + H, H), :]                     # (H, N)
        mean = jnp.mean(h, axis=-1, keepdims=True)              # (H, 1) lane reduce
        ctr = h - mean
        var = jnp.mean(ctr * ctr, axis=-1, keepdims=True)
        h_norm = ctr * lax.rsqrt(var + EPS)
        return jnp.maximum(gamma * h_norm + beta, 0.0)

    net = top_ref[pl.ds(0, H), :]                               # fc_p output (H, N)

    # 5 x CResnetBlockConv — static Python unroll (5 iters, 4-vreg activations:
    # vreg live ranges are nowhere near 64, and all slices stay static).
    for i in range(N_BLOCKS):
        h0 = cbn_relu(net, 2 * i)
        hid = mm(fcw_ref[2 * i], h0) + fcb_ref[2 * i]           # (H, N)
        h1 = cbn_relu(hid, 2 * i + 1)
        dx = mm(fcw_ref[2 * i + 1], h1) + fcb_ref[2 * i + 1]    # (H, N)
        net = net + dx

    # final CBatchNorm + ReLU + fc_out : Conv1d(H, 1, 1)
    final = cbn_relu(net, N_CBN - 1)
    wo = wo_bo_ref[pl.ds(0, 1), :]                              # (1, H)
    bo = wo_bo_ref[pl.ds(1, 1), pl.ds(0, 1)]                    # (1, 1)
    out_ref[...] = mm(wo, final) + bo                           # (1, N) lane-dense


# ---------------- wrapper -----------------------------------------------------
@jax.jit
def decoder_forward(p, c, params):
    """p: (B, T, D_IN), c: (B, L_DIM) -> (B, T)."""
    f32 = jnp.float32

    # Fused operand: [p^T ; c^T (repeated per point) ; ones]  -> (K_TOP, N).
    pT = p.reshape(N, D_IN).astype(f32).T                       # (D_IN, N)
    cT = jnp.repeat(c.astype(f32), T, axis=0).T                 # (L_DIM, N)
    x_top = jnp.concatenate([pT, cT, jnp.ones((1, N), f32)], axis=0)

    # Fused block-diagonal weight (M_TOP, K_TOP):
    #   [ wp^T   0      bp  ]
    #   [ 0      wg^T   bg  ]   (gamma/beta stacked per CBN)
    #   [ 0      wb^T   bb  ]
    wgT = jnp.swapaxes(params["wg"], 1, 2)                      # (N_CBN, H, L)
    wbT = jnp.swapaxes(params["wb"], 1, 2)
    bgT = jnp.swapaxes(params["bg"], 1, 2)                      # (N_CBN, H, 1)
    bbT = jnp.swapaxes(params["bb"], 1, 2)
    w_gb = jnp.concatenate([wgT, wbT], axis=1).reshape(2 * N_CBN * H, L_DIM)
    b_gb = jnp.concatenate([bgT, bbT], axis=1).reshape(2 * N_CBN * H, 1)

    w_top = jnp.zeros((M_TOP, K_TOP), f32)
    w_top = w_top.at[:H, :D_IN].set(params["wp"].T.astype(f32))
    w_top = w_top.at[:H, K_TOP - 1:].set(params["bp"].reshape(H, 1).astype(f32))
    w_top = w_top.at[H:, D_IN:D_IN + L_DIM].set(w_gb.astype(f32))
    w_top = w_top.at[H:, K_TOP - 1:].set(b_gb.astype(f32))

    fcw = jnp.swapaxes(params["fcw"], 1, 2).astype(f32)         # (N_FC, H, H) = W.T
    fcb = jnp.swapaxes(params["fcb"], 1, 2).astype(f32)         # (N_FC, H, 1)

    # fc_out weight + bias packed into one tiny buffer (fewer DMA descriptors).
    wo_bo = jnp.zeros((2, H), f32)
    wo_bo = wo_bo.at[0, :].set(params["wo"][:, 0].astype(f32))
    wo_bo = wo_bo.at[1, 0].set(params["bo"][0, 0].astype(f32))

    flops = (2 * M_TOP * K_TOP * N          # fused fc_p + gamma/beta matmul
             + 2 * N * H * H * N_FC         # block fc's
             + 2 * N * H)                   # fc_out
    bytes_accessed = 4 * (x_top.size + w_top.size + fcw.size + fcb.size
                          + wo_bo.size + N)

    vmem = pl.BlockSpec(memory_space=pltpu.MemorySpace.VMEM)
    out = pl.pallas_call(
        decoder_kernel,
        out_shape=jax.ShapeDtypeStruct((1, N), jnp.float32),
        in_specs=[vmem] * 5,
        out_specs=vmem,
        scratch_shapes=[pltpu.VMEM((M_TOP, N), jnp.float32)],
        cost_estimate=pl.CostEstimate(flops=flops,
                                      transcendentals=N_CBN * H,
                                      bytes_accessed=bytes_accessed),
    )(x_top, w_top, fcw, fcb, wo_bo)
    return out.reshape(B, T)


# ---------------- pure-JAX reference (mirrors the PyTorch module) -------------
def decoder_reference(p, c, params):
    hi = lax.Precision.HIGHEST

    def dot(a, b):
        return jnp.dot(a.astype(jnp.float32), b.astype(jnp.float32),
                       preferred_element_type=jnp.float32, precision=hi)

    x = p.reshape(N, D_IN).astype(jnp.float32)
    ce = jnp.repeat(c.astype(jnp.float32), T, axis=0)

    def cbn(h, idx):
        gamma = dot(ce, params["wg"][idx]) + params["bg"][idx]
        beta = dot(ce, params["wb"][idx]) + params["bb"][idx]
        mean = jnp.mean(h, axis=0, keepdims=True)
        var = jnp.mean((h - mean) ** 2, axis=0, keepdims=True)
        return gamma * (h - mean) / jnp.sqrt(var + EPS) + beta

    net = dot(x, params["wp"]) + params["bp"]
    for i in range(N_BLOCKS):
        hid = dot(jnp.maximum(cbn(net, 2 * i), 0.0),
                  params["fcw"][2 * i]) + params["fcb"][2 * i]
        dx = dot(jnp.maximum(cbn(hid, 2 * i + 1), 0.0),
                 params["fcw"][2 * i + 1]) + params["fcb"][2 * i + 1]
        net = net + dx
    out = dot(jnp.maximum(cbn(net, N_CBN - 1), 0.0), params["wo"]) + params["bo"]
    return out.reshape(B, T)


# ---------------- deterministic parameter construction ------------------------
def make_params(key):
    # NOTE: the PyTorch module zero-inits conv_gamma/conv_beta weights and
    # fc_1 weights; here we use small random values instead so the kernel
    # exercises every compute path non-trivially (deterministic via PRNGKey).
    ks = jax.random.split(key, 10)
    s = 0.2
    return {
        "wp": s * jax.random.normal(ks[0], (D_IN, H), jnp.float32),
        "bp": s * jax.random.normal(ks[1], (1, H), jnp.float32),
        "wg": s * jax.random.normal(ks[2], (N_CBN, L_DIM, H), jnp.float32),
        "bg": 1.0 + s * jax.random.normal(ks[3], (N_CBN, 1, H), jnp.float32),
        "wb": s * jax.random.normal(ks[4], (N_CBN, L_DIM, H), jnp.float32),
        "bb": s * jax.random.normal(ks[5], (N_CBN, 1, H), jnp.float32),
        "fcw": s * jax.random.normal(ks[6], (N_FC, H, H), jnp.float32),
        "fcb": s * jax.random.normal(ks[7], (N_FC, 1, H), jnp.float32),
        "wo": s * jax.random.normal(ks[8], (H, 1), jnp.float32),
        "bo": s * jax.random.normal(ks[9], (1, 1), jnp.float32),
    }


if __name__ == "__main__":
    key = jax.random.PRNGKey(0)
    kp, kc, kw = jax.random.split(key, 3)
    p = jax.random.normal(kp, (B, T, D_IN), jnp.float32)    # query points
    c = jax.random.normal(kc, (B, L_DIM), jnp.float32)      # latent codes
    params = make_params(kw)

    out = jax.block_until_ready(decoder_forward(p, c, params))
    assert out.shape == (B, T), out.shape

    # f32 reference (PyTorch training-mode semantics, precision=HIGHEST).
    # All-f32 kernel matmuls make this a tight comparison.
    ref = decoder_reference(p, c, params)
    max_err = float(jnp.max(jnp.abs(out - ref)))
    assert jnp.allclose(out, ref, rtol=2e-3, atol=2e-3), max_err

    print("KERNEL_OK")
</pallas_src>

<mosaic_0001>
module attributes {stable_mosaic.version = 11 : i64} {
  func.func @decoder_kernel(%arg0: memref<12x128xf32, #tpu.memory_space<vmem>>, %arg1: memref<736x12xf32, #tpu.memory_space<vmem>>, %arg2: memref<10x32x32xf32, #tpu.memory_space<vmem>>, %arg3: memref<10x32x1xf32, #tpu.memory_space<vmem>>, %arg4: memref<2x32xf32, #tpu.memory_space<vmem>>, %arg5: memref<1x128xf32, #tpu.memory_space<vmem>>, %arg6: memref<736x128xf32, #tpu.memory_space<vmem>>) attributes {dimension_semantics = [], scalar_prefetch = 0 : i64, scratch_operands = 1 : i64, tpu.core_type = #tpu.core_type<tc>} {
    %c0 = arith.constant 0 : index
    %c0_0 = arith.constant 0 : index
    %0 = vector.load %arg1[%c0, %c0_0] : memref<736x12xf32, #tpu.memory_space<vmem>>, vector<736x12xf32>
    %c0_1 = arith.constant 0 : index
    %c0_2 = arith.constant 0 : index
    %1 = vector.load %arg0[%c0_1, %c0_2] : memref<12x128xf32, #tpu.memory_space<vmem>>, vector<12x128xf32>
    %cst = arith.constant dense<0.000000e+00> : vector<736x128xf32>
    %2 = tpu.matmul %0, %1, %cst {dimension_numbers = #tpu.dot_dimension_numbers<[1], [0], [0], [1], [0, 0, 1, 1], [], []>} : vector<736x12xf32>, vector<12x128xf32>, vector<736x128xf32> -> vector<736x128xf32>
    %c0_3 = arith.constant 0 : index
    %c0_4 = arith.constant 0 : index
    %3 = vector.load %arg6[%c0_3, %c0_4] : memref<736x128xf32, #tpu.memory_space<vmem>>, vector<736x128xf32>
    tpu.vector_store %arg6[%c0_3, %c0_4], %2 {strides = array<i32>} : memref<736x128xf32, #tpu.memory_space<vmem>>, vector<736x128xf32>,
    %c0_5 = arith.constant 0 : index
    %c0_6 = arith.constant 0 : index
    %4 = vector.load %arg6[%c0_5, %c0_6] : memref<736x128xf32, #tpu.memory_space<vmem>>, vector<32x128xf32>
    %c32 = arith.constant 32 : index
    %c0_7 = arith.constant 0 : index
    %5 = vector.load %arg6[%c32, %c0_7] : memref<736x128xf32, #tpu.memory_space<vmem>>, vector<32x128xf32>
    %c64 = arith.constant 64 : index
    %c0_8 = arith.constant 0 : index
    %6 = vector.load %arg6[%c64, %c0_8] : memref<736x128xf32, #tpu.memory_space<vmem>>, vector<32x128xf32>
    %cst_9 = arith.constant dense<0.000000e+00> : vector<32xf32>
    %7 = vector.multi_reduction <add>, %4, %cst_9 [1] : vector<32x128xf32> to vector<32xf32>
    %8 = vector.shape_cast %7 : vector<32xf32> to vector<32x1xf32>
    %cst_10 = arith.constant 1.280000e+02 : f32
    %9 = vector.broadcast %cst_10 : f32 to vector<32x1xf32>
    %10 = arith.divf %8, %9 : vector<32x1xf32>
    %11 = vector.broadcast %10 : vector<32x1xf32> to vector<32x128xf32>
    %12 = arith.subf %4, %11 : vector<32x128xf32>
    %13 = arith.mulf %12, %12 : vector<32x128xf32>
    %cst_11 = arith.constant dense<0.000000e+00> : vector<32xf32>
    %14 = vector.multi_reduction <add>, %13, %cst_11 [1] : vector<32x128xf32> to vector<32xf32>
    %15 = vector.shape_cast %14 : vector<32xf32> to vector<32x1xf32>
    %cst_12 = arith.constant 1.280000e+02 : f32
    %16 = vector.broadcast %cst_12 : f32 to vector<32x1xf32>
    %17 = arith.divf %15, %16 : vector<32x1xf32>
    %cst_13 = arith.constant 9.99999974E-6 : f32
    %18 = vector.broadcast %cst_13 : f32 to vector<32x1xf32>
    %19 = arith.addf %17, %18 : vector<32x1xf32>
    %20 = math.rsqrt %19 : vector<32x1xf32>
    %21 = vector.broadcast %20 : vector<32x1xf32> to vector<32x128xf32>
    %22 = arith.mulf %12, %21 : vector<32x128xf32>
    %23 = arith.mulf %5, %22 : vector<32x128xf32>
    %24 = arith.addf %23, %6 : vector<32x128xf32>
    %cst_14 = arith.constant 0.000000e+00 : f32
    %25 = vector.broadcast %cst_14 : f32 to vector<32x128xf32>
    %26 = arith.maximumf %24, %25 : vector<32x128xf32>
    %c0_15 = arith.constant 0 : index
    %c0_16 = arith.constant 0 : index
    %c0_17 = arith.constant 0 : index
    %27 = vector.load %arg2[%c0_15, %c0_16, %c0_17] : memref<10x32x32xf32, #tpu.memory_space<vmem>>, vector<1x32x32xf32>
    %28 = vector.shape_cast %27 : vector<1x32x32xf32> to vector<32x32xf32>
    %cst_18 = arith.constant dense<0.000000e+00> : vector<32x128xf32>
    %29 = tpu.matmul %28, %26, %cst_18 {dimension_numbers = #tpu.dot_dimension_numbers<[1], [0], [0], [1], [0, 0, 1, 1], [], []>} : vector<32x32xf32>, vector<32x128xf32>, vector<32x128xf32> -> vector<32x128xf32>
    %c0_19 = arith.constant 0 : index
    %c0_20 = arith.constant 0 : index
    %c0_21 = arith.constant 0 : index
    %30 = vector.load %arg3[%c0_19, %c0_20, %c0_21] : memref<10x32x1xf32, #tpu.memory_space<vmem>>, vector<1x32x1xf32>
    %31 = vector.shape_cast %30 : vector<1x32x1xf32> to vector<32x1xf32>
    %32 = vector.broadcast %31 : vector<32x1xf32> to vector<32x128xf32>
    %33 = arith.addf %29, %32 : vector<32x128xf32>
    %c96 = arith.constant 96 : index
    %c0_22 = arith.constant 0 : index
    %34 = vector.load %arg6[%c96, %c0_22] : memref<736x128xf32, #tpu.memory_space<vmem>>, vector<32x128xf32>
    %c128 = arith.constant 128 : index
    %c0_23 = arith.constant 0 : index
    %35 = vector.load %arg6[%c128, %c0_23] : memref<736x128xf32, #tpu.memory_space<vmem>>, vector<32x128xf32>
    %cst_24 = arith.constant dense<0.000000e+00> : vector<32xf32>
    %36 = vector.multi_reduction <add>, %33, %cst_24 [1] : vector<32x128xf32> to vector<32xf32>
    %37 = vector.shape_cast %36 : vector<32xf32> to vector<32x1xf32>
    %cst_25 = arith.constant 1.280000e+02 : f32
    %38 = vector.broadcast %cst_25 : f32 to vector<32x1xf32>
    %39 = arith.divf %37, %38 : vector<32x1xf32>
    %40 = vector.broadcast %39 : vector<32x1xf32> to vector<32x128xf32>
    %41 = arith.subf %33, %40 : vector<32x128xf32>
    %42 = arith.mulf %41, %41 : vector<32x128xf32>
    %cst_26 = arith.constant dense<0.000000e+00> : vector<32xf32>
    %43 = vector.multi_reduction <add>, %42, %cst_26 [1] : vector<32x128xf32> to vector<32xf32>
    %44 = vector.shape_cast %43 : vector<32xf32> to vector<32x1xf32>
    %cst_27 = arith.constant 1.280000e+02 : f32
    %45 = vector.broadcast %cst_27 : f32 to vector<32x1xf32>
    %46 = arith.divf %44, %45 : vector<32x1xf32>
    %cst_28 = arith.constant 9.99999974E-6 : f32
    %47 = vector.broadcast %cst_28 : f32 to vector<32x1xf32>
    %48 = arith.addf %46, %47 : vector<32x1xf32>
    %49 = math.rsqrt %48 : vector<32x1xf32>
    %50 = vector.broadcast %49 : vector<32x1xf32> to vector<32x128xf32>
    %51 = arith.mulf %41, %50 : vector<32x128xf32>
    %52 = arith.mulf %34, %51 : vector<32x128xf32>
    %53 = arith.addf %52, %35 : vector<32x128xf32>
    %cst_29 = arith.constant 0.000000e+00 : f32
    %54 = vector.broadcast %cst_29 : f32 to vector<32x128xf32>
    %55 = arith.maximumf %53, %54 : vector<32x128xf32>
    %c1 = arith.constant 1 : index
    %c0_30 = arith.constant 0 : index
    %c0_31 = arith.constant 0 : index
    %56 = vector.load %arg2[%c1, %c0_30, %c0_31] : memref<10x32x32xf32, #tpu.memory_space<vmem>>, vector<1x32x32xf32>
    %57 = vector.shape_cast %56 : vector<1x32x32xf32> to vector<32x32xf32>
    %cst_32 = arith.constant dense<0.000000e+00> : vector<32x128xf32>
    %58 = tpu.matmul %57, %55, %cst_32 {dimension_numbers = #tpu.dot_dimension_numbers<[1], [0], [0], [1], [0, 0, 1, 1], [], []>} : vector<32x32xf32>, vector<32x128xf32>, vector<32x128xf32> -> vector<32x128xf32>
    %c1_33 = arith.constant 1 : index
    %c0_34 = arith.constant 0 : index
    %c0_35 = arith.constant 0 : index
    %59 = vector.load %arg3[%c1_33, %c0_34, %c0_35] : memref<10x32x1xf32, #tpu.memory_space<vmem>>, vector<1x32x1xf32>
    %60 = vector.shape_cast %59 : vector<1x32x1xf32> to vector<32x1xf32>
    %61 = vector.broadcast %60 : vector<32x1xf32> to vector<32x128xf32>
    %62 = arith.addf %58, %61 : vector<32x128xf32>
    %63 = arith.addf %4, %62 : vector<32x128xf32>
    %c160 = arith.constant 160 : index
    %c0_36 = arith.constant 0 : index
    %64 = vector.load %arg6[%c160, %c0_36] : memref<736x128xf32, #tpu.memory_space<vmem>>, vector<32x128xf32>
    %c192 = arith.constant 192 : index
    %c0_37 = arith.constant 0 : index
    %65 = vector.load %arg6[%c192, %c0_37] : memref<736x128xf32, #tpu.memory_space<vmem>>, vector<32x128xf32>
    %cst_38 = arith.constant dense<0.000000e+00> : vector<32xf32>
    %66 = vector.multi_reduction <add>, %63, %cst_38 [1] : vector<32x128xf32> to vector<32xf32>
    %67 = vector.shape_cast %66 : vector<32xf32> to vector<32x1xf32>
    %cst_39 = arith.constant 1.280000e+02 : f32
    %68 = vector.broadcast %cst_39 : f32 to vector<32x1xf32>
    %69 = arith.divf %67, %68 : vector<32x1xf32>
    %70 = vector.broadcast %69 : vector<32x1xf32> to vector<32x128xf32>
    %71 = arith.subf %63, %70 : vector<32x128xf32>
    %72 = arith.mulf %71, %71 : vector<32x128xf32>
    %cst_40 = arith.constant dense<0.000000e+00> : vector<32xf32>
    %73 = vector.multi_reduction <add>, %72, %cst_40 [1] : vector<32x128xf32> to vector<32xf32>
    %74 = vector.shape_cast %73 : vector<32xf32> to vector<32x1xf32>
    %cst_41 = arith.constant 1.280000e+02 : f32
    %75 = vector.broadcast %cst_41 : f32 to vector<32x1xf32>
    %76 = arith.divf %74, %75 : vector<32x1xf32>
    %cst_42 = arith.constant 9.99999974E-6 : f32
    %77 = vector.broadcast %cst_42 : f32 to vector<32x1xf32>
    %78 = arith.addf %76, %77 : vector<32x1xf32>
    %79 = math.rsqrt %78 : vector<32x1xf32>
    %80 = vector.broadcast %79 : vector<32x1xf32> to vector<32x128xf32>
    %81 = arith.mulf %71, %80 : vector<32x128xf32>
    %82 = arith.mulf %64, %81 : vector<32x128xf32>
    %83 = arith.addf %82, %65 : vector<32x128xf32>
    %cst_43 = arith.constant 0.000000e+00 : f32
    %84 = vector.broadcast %cst_43 : f32 to vector<32x128xf32>
    %85 = arith.maximumf %83, %84 : vector<32x128xf32>
    %c2 = arith.constant 2 : index
    %c0_44 = arith.constant 0 : index
    %c0_45 = arith.constant 0 : index
    %86 = vector.load %arg2[%c2, %c0_44, %c0_45] : memref<10x32x32xf32, #tpu.memory_space<vmem>>, vector<1x32x32xf32>
    %87 = vector.shape_cast %86 : vector<1x32x32xf32> to vector<32x32xf32>
    %cst_46 = arith.constant dense<0.000000e+00> : vector<32x128xf32>
    %88 = tpu.matmul %87, %85, %cst_46 {dimension_numbers = #tpu.dot_dimension_numbers<[1], [0], [0], [1], [0, 0, 1, 1], [], []>} : vector<32x32xf32>, vector<32x128xf32>, vector<32x128xf32> -> vector<32x128xf32>
    %c2_47 = arith.constant 2 : index
    %c0_48 = arith.constant 0 : index
    %c0_49 = arith.constant 0 : index
    %89 = vector.load %arg3[%c2_47, %c0_48, %c0_49] : memref<10x32x1xf32, #tpu.memory_space<vmem>>, vector<1x32x1xf32>
    %90 = vector.shape_cast %89 : vector<1x32x1xf32> to vector<32x1xf32>
    %91 = vector.broadcast %90 : vector<32x1xf32> to vector<32x128xf32>
    %92 = arith.addf %88, %91 : vector<32x128xf32>
    %c224 = arith.constant 224 : index
    %c0_50 = arith.constant 0 : index
    %93 = vector.load %arg6[%c224, %c0_50] : memref<736x128xf32, #tpu.memory_space<vmem>>, vector<32x128xf32>
    %c256 = arith.constant 256 : index
    %c0_51 = arith.constant 0 : index
    %94 = vector.load %arg6[%c256, %c0_51] : memref<736x128xf32, #tpu.memory_space<vmem>>, vector<32x128xf32>
    %cst_52 = arith.constant dense<0.000000e+00> : vector<32xf32>
    %95 = vector.multi_reduction <add>, %92, %cst_52 [1] : vector<32x128xf32> to vector<32xf32>
    %96 = vector.shape_cast %95 : vector<32xf32> to vector<32x1xf32>
    %cst_53 = arith.constant 1.280000e+02 : f32
    %97 = vector.broadcast %cst_53 : f32 to vector<32x1xf32>
    %98 = arith.divf %96, %97 : vector<32x1xf32>
    %99 = vector.broadcast %98 : vector<32x1xf32> to vector<32x128xf32>
    %100 = arith.subf %92, %99 : vector<32x128xf32>
    %101 = arith.mulf %100, %100 : vector<32x128xf32>
    %cst_54 = arith.constant dense<0.000000e+00> : vector<32xf32>
    %102 = vector.multi_reduction <add>, %101, %cst_54 [1] : vector<32x128xf32> to vector<32xf32>
    %103 = vector.shape_cast %102 : vector<32xf32> to vector<32x1xf32>
    %cst_55 = arith.constant 1.280000e+02 : f32
    %104 = vector.broadcast %cst_55 : f32 to vector<32x1xf32>
    %105 = arith.divf %103, %104 : vector<32x1xf32>
    %cst_56 = arith.constant 9.99999974E-6 : f32
    %106 = vector.broadcast %cst_56 : f32 to vector<32x1xf32>
    %107 = arith.addf %105, %106 : vector<32x1xf32>
    %108 = math.rsqrt %107 : vector<32x1xf32>
    %109 = vector.broadcast %108 : vector<32x1xf32> to vector<32x128xf32>
    %110 = arith.mulf %100, %109 : vector<32x128xf32>
    %111 = arith.mulf %93, %110 : vector<32x128xf32>
    %112 = arith.addf %111, %94 : vector<32x128xf32>
    %cst_57 = arith.constant 0.000000e+00 : f32
    %113 = vector.broadcast %cst_57 : f32 to vector<32x128xf32>
    %114 = arith.maximumf %112, %113 : vector<32x128xf32>
    %c3 = arith.constant 3 : index
    %c0_58 = arith.constant 0 : index
    %c0_59 = arith.constant 0 : index
    %115 = vector.load %arg2[%c3, %c0_58, %c0_59] : memref<10x32x32xf32, #tpu.memory_space<vmem>>, vector<1x32x32xf32>
    %116 = vector.shape_cast %115 : vector<1x32x32xf32> to vector<32x32xf32>
    %cst_60 = arith.constant dense<0.000000e+00> : vector<32x128xf32>
    %117 = tpu.matmul %116, %114, %cst_60 {dimension_numbers = #tpu.dot_dimension_numbers<[1], [0], [0], [1], [0, 0, 1, 1], [], []>} : vector<32x32xf32>, vector<32x128xf32>, vector<32x128xf32> -> vector<32x128xf32>
    %c3_61 = arith.constant 3 : index
    %c0_62 = arith.constant 0 : index
    %c0_63 = arith.constant 0 : index
    %118 = vector.load %arg3[%c3_61, %c0_62, %c0_63] : memref<10x32x1xf32, #tpu.memory_space<vmem>>, vector<1x32x1xf32>
    %119 = vector.shape_cast %118 : vector<1x32x1xf32> to vector<32x1xf32>
    %120 = vector.broadcast %119 : vector<32x1xf32> to vector<32x128xf32>
    %121 = arith.addf %117, %120 : vector<32x128xf32>
    %122 = arith.addf %63, %121 : vector<32x128xf32>
    %c288 = arith.constant 288 : index
    %c0_64 = arith.constant 0 : index
    %123 = vector.load %arg6[%c288, %c0_64] : memref<736x128xf32, #tpu.memory_space<vmem>>, vector<32x128xf32>
    %c320 = arith.constant 320 : index
    %c0_65 = arith.constant 0 : index
    %124 = vector.load %arg6[%c320, %c0_65] : memref<736x128xf32, #tpu.memory_space<vmem>>, vector<32x128xf32>
    %cst_66 = arith.constant dense<0.000000e+00> : vector<32xf32>
    %125 = vector.multi_reduction <add>, %122, %cst_66 [1] : vector<32x128xf32> to vector<32xf32>
    %126 = vector.shape_cast %125 : vector<32xf32> to vector<32x1xf32>
    %cst_67 = arith.constant 1.280000e+02 : f32
    %127 = vector.broadcast %cst_67 : f32 to vector<32x1xf32>
    %128 = arith.divf %126, %127 : vector<32x1xf32>
    %129 = vector.broadcast %128 : vector<32x1xf32> to vector<32x128xf32>
    %130 = arith.subf %122, %129 : vector<32x128xf32>
    %131 = arith.mulf %130, %130 : vector<32x128xf32>
    %cst_68 = arith.constant dense<0.000000e+00> : vector<32xf32>
    %132 = vector.multi_reduction <add>, %131, %cst_68 [1] : vector<32x128xf32> to vector<32xf32>
    %133 = vector.shape_cast %132 : vector<32xf32> to vector<32x1xf32>
    %cst_69 = arith.constant 1.280000e+02 : f32
    %134 = vector.broadcast %cst_69 : f32 to vector<32x1xf32>
    %135 = arith.divf %133, %134 : vector<32x1xf32>
    %cst_70 = arith.constant 9.99999974E-6 : f32
    %136 = vector.broadcast %cst_70 : f32 to vector<32x1xf32>
    %137 = arith.addf %135, %136 : vector<32x1xf32>
    %138 = math.rsqrt %137 : vector<32x1xf32>
    %139 = vector.broadcast %138 : vector<32x1xf32> to vector<32x128xf32>
    %140 = arith.mulf %130, %139 : vector<32x128xf32>
    %141 = arith.mulf %123, %140 : vector<32x128xf32>
    %142 = arith.addf %141, %124 : vector<32x128xf32>
    %cst_71 = arith.constant 0.000000e+00 : f32
    %143 = vector.broadcast %cst_71 : f32 to vector<32x128xf32>
    %144 = arith.maximumf %142, %143 : vector<32x128xf32>
    %c4 = arith.constant 4 : index
    %c0_72 = arith.constant 0 : index
    %c0_73 = arith.constant 0 : index
    %145 = vector.load %arg2[%c4, %c0_72, %c0_73] : memref<10x32x32xf32, #tpu.memory_space<vmem>>, vector<1x32x32xf32>
    %146 = vector.shape_cast %145 : vector<1x32x32xf32> to vector<32x32xf32>
    %cst_74 = arith.constant dense<0.000000e+00> : vector<32x128xf32>
    %147 = tpu.matmul %146, %144, %cst_74 {dimension_numbers = #tpu.dot_dimension_numbers<[1], [0], [0], [1], [0, 0, 1, 1], [], []>} : vector<32x32xf32>, vector<32x128xf32>, vector<32x128xf32> -> vector<32x128xf32>
    %c4_75 = arith.constant 4 : index
    %c0_76 = arith.constant 0 : index
    %c0_77 = arith.constant 0 : index
    %148 = vector.load %arg3[%c4_75, %c0_76, %c0_77] : memref<10x32x1xf32, #tpu.memory_space<vmem>>, vector<1x32x1xf32>
    %149 = vector.shape_cast %148 : vector<1x32x1xf32> to vector<32x1xf32>
    %150 = vector.broadcast %149 : vector<32x1xf32> to vector<32x128xf32>
    %151 = arith.addf %147, %150 : vector<32x128xf32>
    %c352 = arith.constant 352 : index
    %c0_78 = arith.constant 0 : index
    %152 = vector.load %arg6[%c352, %c0_78] : memref<736x128xf32, #tpu.memory_space<vmem>>, vector<32x128xf32>
    %c384 = arith.constant 384 : index
    %c0_79 = arith.constant 0 : index
    %153 = vector.load %arg6[%c384, %c0_79] : memref<736x128xf32, #tpu.memory_space<vmem>>, vector<32x128xf32>
    %cst_80 = arith.constant dense<0.000000e+00> : vector<32xf32>
    %154 = vector.multi_reduction <add>, %151, %cst_80 [1] : vector<32x128xf32> to vector<32xf32>
    %155 = vector.shape_cast %154 : vector<32xf32> to vector<32x1xf32>
    %cst_81 = arith.constant 1.280000e+02 : f32
    %156 = vector.broadcast %cst_81 : f32 to vector<32x1xf32>
    %157 = arith.divf %155, %156 : vector<32x1xf32>
    %158 = vector.broadcast %157 : vector<32x1xf32> to vector<32x128xf32>
    %159 = arith.subf %151, %158 : vector<32x128xf32>
    %160 = arith.mulf %159, %159 : vector<32x128xf32>
    %cst_82 = arith.constant dense<0.000000e+00> : vector<32xf32>
    %161 = vector.multi_reduction <add>, %160, %cst_82 [1] : vector<32x128xf32> to vector<32xf32>
    %162 = vector.shape_cast %161 : vector<32xf32> to vector<32x1xf32>
    %cst_83 = arith.constant 1.280000e+02 : f32
    %163 = vector.broadcast %cst_83 : f32 to vector<32x1xf32>
    %164 = arith.divf %162, %163 : vector<32x1xf32>
    %cst_84 = arith.constant 9.99999974E-6 : f32
    %165 = vector.broadcast %cst_84 : f32 to vector<32x1xf32>
    %166 = arith.addf %164, %165 : vector<32x1xf32>
    %167 = math.rsqrt %166 : vector<32x1xf32>
    %168 = vector.broadcast %167 : vector<32x1xf32> to vector<32x128xf32>
    %169 = arith.mulf %159, %168 : vector<32x128xf32>
    %170 = arith.mulf %152, %169 : vector<32x128xf32>
    %171 = arith.addf %170, %153 : vector<32x128xf32>
    %cst_85 = arith.constant 0.000000e+00 : f32
    %172 = vector.broadcast %cst_85 : f32 to vector<32x128xf32>
    %173 = arith.maximumf %171, %172 : vector<32x128xf32>
    %c5 = arith.constant 5 : index
    %c0_86 = arith.constant 0 : index
    %c0_87 = arith.constant 0 : index
    %174 = vector.load %arg2[%c5, %c0_86, %c0_87] : memref<10x32x32xf32, #tpu.memory_space<vmem>>, vector<1x32x32xf32>
    %175 = vector.shape_cast %174 : vector<1x32x32xf32> to vector<32x32xf32>
    %cst_88 = arith.constant dense<0.000000e+00> : vector<32x128xf32>
    %176 = tpu.matmul %175, %173, %cst_88 {dimension_numbers = #tpu.dot_dimension_numbers<[1], [0], [0], [1], [0, 0, 1, 1], [], []>} : vector<32x32xf32>, vector<32x128xf32>, vector<32x128xf32> -> vector<32x128xf32>
    %c5_89 = arith.constant 5 : index
    %c0_90 = arith.constant 0 : index
    %c0_91 = arith.constant 0 : index
    %177 = vector.load %arg3[%c5_89, %c0_90, %c0_91] : memref<10x32x1xf32, #tpu.memory_space<vmem>>, vector<1x32x1xf32>
    %178 = vector.shape_cast %177 : vector<1x32x1xf32> to vector<32x1xf32>
    %179 = vector.broadcast %178 : vector<32x1xf32> to vector<32x128xf32>
    %180 = arith.addf %176, %179 : vector<32x128xf32>
    %181 = arith.addf %122, %180 : vector<32x128xf32>
    %c416 = arith.constant 416 : index
    %c0_92 = arith.constant 0 : index
    %182 = vector.load %arg6[%c416, %c0_92] : memref<736x128xf32, #tpu.memory_space<vmem>>, vector<32x128xf32>
    %c448 = arith.constant 448 : index
    %c0_93 = arith.constant 0 : index
    %183 = vector.load %arg6[%c448, %c0_93] : memref<736x128xf32, #tpu.memory_space<vmem>>, vector<32x128xf32>
    %cst_94 = arith.constant dense<0.000000e+00> : vector<32xf32>
    %184 = vector.multi_reduction <add>, %181, %cst_94 [1] : vector<32x128xf32> to vector<32xf32>
    %185 = vector.shape_cast %184 : vector<32xf32> to vector<32x1xf32>
    %cst_95 = arith.constant 1.280000e+02 : f32
    %186 = vector.broadcast %cst_95 : f32 to vector<32x1xf32>
    %187 = arith.divf %185, %186 : vector<32x1xf32>
    %188 = vector.broadcast %187 : vector<32x1xf32> to vector<32x128xf32>
    %189 = arith.subf %181, %188 : vector<32x128xf32>
    %190 = arith.mulf %189, %189 : vector<32x128xf32>
    %cst_96 = arith.constant dense<0.000000e+00> : vector<32xf32>
    %191 = vector.multi_reduction <add>, %190, %cst_96 [1] : vector<32x128xf32> to vector<32xf32>
    %192 = vector.shape_cast %191 : vector<32xf32> to vector<32x1xf32>
    %cst_97 = arith.constant 1.280000e+02 : f32
    %193 = vector.broadcast %cst_97 : f32 to vector<32x1xf32>
    %194 = arith.divf %192, %193 : vector<32x1xf32>
    %cst_98 = arith.constant 9.99999974E-6 : f32
    %195 = vector.broadcast %cst_98 : f32 to vector<32x1xf32>
    %196 = arith.addf %194, %195 : vector<32x1xf32>
    %197 = math.rsqrt %196 : vector<32x1xf32>
    %198 = vector.broadcast %197 : vector<32x1xf32> to vector<32x128xf32>
    %199 = arith.mulf %189, %198 : vector<32x128xf32>
    %200 = arith.mulf %182, %199 : vector<32x128xf32>
    %201 = arith.addf %200, %183 : vector<32x128xf32>
    %cst_99 = arith.constant 0.000000e+00 : f32
    %202 = vector.broadcast %cst_99 : f32 to vector<32x128xf32>
    %203 = arith.maximumf %201, %202 : vector<32x128xf32>
    %c6 = arith.constant 6 : index
    %c0_100 = arith.constant 0 : index
    %c0_101 = arith.constant 0 : index
    %204 = vector.load %arg2[%c6, %c0_100, %c0_101] : memref<10x32x32xf32, #tpu.memory_space<vmem>>, vector<1x32x32xf32>
    %205 = vector.shape_cast %204 : vector<1x32x32xf32> to vector<32x32xf32>
    %cst_102 = arith.constant dense<0.000000e+00> : vector<32x128xf32>
    %206 = tpu.matmul %205, %203, %cst_102 {dimension_numbers = #tpu.dot_dimension_numbers<[1], [0], [0], [1], [0, 0, 1, 1], [], []>} : vector<32x32xf32>, vector<32x128xf32>, vector<32x128xf32> -> vector<32x128xf32>
    %c6_103 = arith.constant 6 : index
    %c0_104 = arith.constant 0 : index
    %c0_105 = arith.constant 0 : index
    %207 = vector.load %arg3[%c6_103, %c0_104, %c0_105] : memref<10x32x1xf32, #tpu.memory_space<vmem>>, vector<1x32x1xf32>
    %208 = vector.shape_cast %207 : vector<1x32x1xf32> to vector<32x1xf32>
    %209 = vector.broadcast %208 : vector<32x1xf32> to vector<32x128xf32>
    %210 = arith.addf %206, %209 : vector<32x128xf32>
    %c480 = arith.constant 480 : index
    %c0_106 = arith.constant 0 : index
    %211 = vector.load %arg6[%c480, %c0_106] : memref<736x128xf32, #tpu.memory_space<vmem>>, vector<32x128xf32>
    %c512 = arith.constant 512 : index
    %c0_107 = arith.constant 0 : index
    %212 = vector.load %arg6[%c512, %c0_107] : memref<736x128xf32, #tpu.memory_space<vmem>>, vector<32x128xf32>
    %cst_108 = arith.constant dense<0.000000e+00> : vector<32xf32>
    %213 = vector.multi_reduction <add>, %210, %cst_108 [1] : vector<32x128xf32> to vector<32xf32>
    %214 = vector.shape_cast %213 : vector<32xf32> to vector<32x1xf32>
    %cst_109 = arith.constant 1.280000e+02 : f32
    %215 = vector.broadcast %cst_109 : f32 to vector<32x1xf32>
    %216 = arith.divf %214, %215 : vector<32x1xf32>
    %217 = vector.broadcast %216 : vector<32x1xf32> to vector<32x128xf32>
    %218 = arith.subf %210, %217 : vector<32x128xf32>
    %219 = arith.mulf %218, %218 : vector<32x128xf32>
    %cst_110 = arith.constant dense<0.000000e+00> : vector<32xf32>
    %220 = vector.multi_reduction <add>, %219, %cst_110 [1] : vector<32x128xf32> to vector<32xf32>
    %221 = vector.shape_cast %220 : vector<32xf32> to vector<32x1xf32>
    %cst_111 = arith.constant 1.280000e+02 : f32
    %222 = vector.broadcast %cst_111 : f32 to vector<32x1xf32>
    %223 = arith.divf %221, %222 : vector<32x1xf32>
    %cst_112 = arith.constant 9.99999974E-6 : f32
    %224 = vector.broadcast %cst_112 : f32 to vector<32x1xf32>
    %225 = arith.addf %223, %224 : vector<32x1xf32>
    %226 = math.rsqrt %225 : vector<32x1xf32>
    %227 = vector.broadcast %226 : vector<32x1xf32> to vector<32x128xf32>
    %228 = arith.mulf %218, %227 : vector<32x128xf32>
    %229 = arith.mulf %211, %228 : vector<32x128xf32>
    %230 = arith.addf %229, %212 : vector<32x128xf32>
    %cst_113 = arith.constant 0.000000e+00 : f32
    %231 = vector.broadcast %cst_113 : f32 to vector<32x128xf32>
    %232 = arith.maximumf %230, %231 : vector<32x128xf32>
    %c7 = arith.constant 7 : index
    %c0_114 = arith.constant 0 : index
    %c0_115 = arith.constant 0 : index
    %233 = vector.load %arg2[%c7, %c0_114, %c0_115] : memref<10x32x32xf32, #tpu.memory_space<vmem>>, vector<1x32x32xf32>
    %234 = vector.shape_cast %233 : vector<1x32x32xf32> to vector<32x32xf32>
    %cst_116 = arith.constant dense<0.000000e+00> : vector<32x128xf32>
    %235 = tpu.matmul %234, %232, %cst_116 {dimension_numbers = #tpu.dot_dimension_numbers<[1], [0], [0], [1], [0, 0, 1, 1], [], []>} : vector<32x32xf32>, vector<32x128xf32>, vector<32x128xf32> -> vector<32x128xf32>
    %c7_117 = arith.constant 7 : index
    %c0_118 = arith.constant 0 : index
    %c0_119 = arith.constant 0 : index
    %236 = vector.load %arg3[%c7_117, %c0_118, %c0_119] : memref<10x32x1xf32, #tpu.memory_space<vmem>>, vector<1x32x1xf32>
    %237 = vector.shape_cast %236 : vector<1x32x1xf32> to vector<32x1xf32>
    %238 = vector.broadcast %237 : vector<32x1xf32> to vector<32x128xf32>
    %239 = arith.addf %235, %238 : vector<32x128xf32>
    %240 = arith.addf %181, %239 : vector<32x128xf32>
    %c544 = arith.constant 544 : index
    %c0_120 = arith.constant 0 : index
    %241 = vector.load %arg6[%c544, %c0_120] : memref<736x128xf32, #tpu.memory_space<vmem>>, vector<32x128xf32>
    %c576 = arith.constant 576 : index
    %c0_121 = arith.constant 0 : index
    %242 = vector.load %arg6[%c576, %c0_121] : memref<736x128xf32, #tpu.memory_space<vmem>>, vector<32x128xf32>
    %cst_122 = arith.constant dense<0.000000e+00> : vector<32xf32>
    %243 = vector.multi_reduction <add>, %240, %cst_122 [1] : vector<32x128xf32> to vector<32xf32>
    %244 = vector.shape_cast %243 : vector<32xf32> to vector<32x1xf32>
    %cst_123 = arith.constant 1.280000e+02 : f32
    %245 = vector.broadcast %cst_123 : f32 to vector<32x1xf32>
    %246 = arith.divf %244, %245 : vector<32x1xf32>
    %247 = vector.broadcast %246 : vector<32x1xf32> to vector<32x128xf32>
    %248 = arith.subf %240, %247 : vector<32x128xf32>
    %249 = arith.mulf %248, %248 : vector<32x128xf32>
    %cst_124 = arith.constant dense<0.000000e+00> : vector<32xf32>
    %250 = vector.multi_reduction <add>, %249, %cst_124 [1] : vector<32x128xf32> to vector<32xf32>
    %251 = vector.shape_cast %250 : vector<32xf32> to vector<32x1xf32>
    %cst_125 = arith.constant 1.280000e+02 : f32
    %252 = vector.broadcast %cst_125 : f32 to vector<32x1xf32>
    %253 = arith.divf %251, %252 : vector<32x1xf32>
    %cst_126 = arith.constant 9.99999974E-6 : f32
    %254 = vector.broadcast %cst_126 : f32 to vector<32x1xf32>
    %255 = arith.addf %253, %254 : vector<32x1xf32>
    %256 = math.rsqrt %255 : vector<32x1xf32>
    %257 = vector.broadcast %256 : vector<32x1xf32> to vector<32x128xf32>
    %258 = arith.mulf %248, %257 : vector<32x128xf32>
    %259 = arith.mulf %241, %258 : vector<32x128xf32>
    %260 = arith.addf %259, %242 : vector<32x128xf32>
    %cst_127 = arith.constant 0.000000e+00 : f32
    %261 = vector.broadcast %cst_127 : f32 to vector<32x128xf32>
    %262 = arith.maximumf %260, %261 : vector<32x128xf32>
    %c8 = arith.constant 8 : index
    %c0_128 = arith.constant 0 : index
    %c0_129 = arith.constant 0 : index
    %263 = vector.load %arg2[%c8, %c0_128, %c0_129] : memref<10x32x32xf32, #tpu.memory_space<vmem>>, vector<1x32x32xf32>
    %264 = vector.shape_cast %263 : vector<1x32x32xf32> to vector<32x32xf32>
    %cst_130 = arith.constant dense<0.000000e+00> : vector<32x128xf32>
    %265 = tpu.matmul %264, %262, %cst_130 {dimension_numbers = #tpu.dot_dimension_numbers<[1], [0], [0], [1], [0, 0, 1, 1], [], []>} : vector<32x32xf32>, vector<32x128xf32>, vector<32x128xf32> -> vector<32x128xf32>
    %c8_131 = arith.constant 8 : index
    %c0_132 = arith.constant 0 : index
    %c0_133 = arith.constant 0 : index
    %266 = vector.load %arg3[%c8_131, %c0_132, %c0_133] : memref<10x32x1xf32, #tpu.memory_space<vmem>>, vector<1x32x1xf32>
    %267 = vector.shape_cast %266 : vector<1x32x1xf32> to vector<32x1xf32>
    %268 = vector.broadcast %267 : vector<32x1xf32> to vector<32x128xf32>
    %269 = arith.addf %265, %268 : vector<32x128xf32>
    %c608 = arith.constant 608 : index
    %c0_134 = arith.constant 0 : index
    %270 = vector.load %arg6[%c608, %c0_134] : memref<736x128xf32, #tpu.memory_space<vmem>>, vector<32x128xf32>
    %c640 = arith.constant 640 : index
    %c0_135 = arith.constant 0 : index
    %271 = vector.load %arg6[%c640, %c0_135] : memref<736x128xf32, #tpu.memory_space<vmem>>, vector<32x128xf32>
    %cst_136 = arith.constant dense<0.000000e+00> : vector<32xf32>
    %272 = vector.multi_reduction <add>, %269, %cst_136 [1] : vector<32x128xf32> to vector<32xf32>
    %273 = vector.shape_cast %272 : vector<32xf32> to vector<32x1xf32>
    %cst_137 = arith.constant 1.280000e+02 : f32
    %274 = vector.broadcast %cst_137 : f32 to vector<32x1xf32>
    %275 = arith.divf %273, %274 : vector<32x1xf32>
    %276 = vector.broadcast %275 : vector<32x1xf32> to vector<32x128xf32>
    %277 = arith.subf %269, %276 : vector<32x128xf32>
    %278 = arith.mulf %277, %277 : vector<32x128xf32>
    %cst_138 = arith.constant dense<0.000000e+00> : vector<32xf32>
    %279 = vector.multi_reduction <add>, %278, %cst_138 [1] : vector<32x128xf32> to vector<32xf32>
    %280 = vector.shape_cast %279 : vector<32xf32> to vector<32x1xf32>
    %cst_139 = arith.constant 1.280000e+02 : f32
    %281 = vector.broadcast %cst_139 : f32 to vector<32x1xf32>
    %282 = arith.divf %280, %281 : vector<32x1xf32>
    %cst_140 = arith.constant 9.99999974E-6 : f32
    %283 = vector.broadcast %cst_140 : f32 to vector<32x1xf32>
    %284 = arith.addf %282, %283 : vector<32x1xf32>
    %285 = math.rsqrt %284 : vector<32x1xf32>
    %286 = vector.broadcast %285 : vector<32x1xf32> to vector<32x128xf32>
    %287 = arith.mulf %277, %286 : vector<32x128xf32>
    %288 = arith.mulf %270, %287 : vector<32x128xf32>
    %289 = arith.addf %288, %271 : vector<32x128xf32>
    %cst_141 = arith.constant 0.000000e+00 : f32
    %290 = vector.broadcast %cst_141 : f32 to vector<32x128xf32>
    %291 = arith.maximumf %289, %290 : vector<32x128xf32>
    %c9 = arith.constant 9 : index
    %c0_142 = arith.constant 0 : index
    %c0_143 = arith.constant 0 : index
    %292 = vector.load %arg2[%c9, %c0_142, %c0_143] : memref<10x32x32xf32, #tpu.memory_space<vmem>>, vector<1x32x32xf32>
    %293 = vector.shape_cast %292 : vector<1x32x32xf32> to vector<32x32xf32>
    %cst_144 = arith.constant dense<0.000000e+00> : vector<32x128xf32>
    %294 = tpu.matmul %293, %291, %cst_144 {dimension_numbers = #tpu.dot_dimension_numbers<[1], [0], [0], [1], [0, 0, 1, 1], [], []>} : vector<32x32xf32>, vector<32x128xf32>, vector<32x128xf32> -> vector<32x128xf32>
    %c9_145 = arith.constant 9 : index
    %c0_146 = arith.constant 0 : index
    %c0_147 = arith.constant 0 : index
    %295 = vector.load %arg3[%c9_145, %c0_146, %c0_147] : memref<10x32x1xf32, #tpu.memory_space<vmem>>, vector<1x32x1xf32>
    %296 = vector.shape_cast %295 : vector<1x32x1xf32> to vector<32x1xf32>
    %297 = vector.broadcast %296 : vector<32x1xf32> to vector<32x128xf32>
    %298 = arith.addf %294, %297 : vector<32x128xf32>
    %299 = arith.addf %240, %298 : vector<32x128xf32>
    %c672 = arith.constant 672 : index
    %c0_148 = arith.constant 0 : index
    %300 = vector.load %arg6[%c672, %c0_148] : memref<736x128xf32, #tpu.memory_space<vmem>>, vector<32x128xf32>
    %c704 = arith.constant 704 : index
    %c0_149 = arith.constant 0 : index
    %301 = vector.load %arg6[%c704, %c0_149] : memref<736x128xf32, #tpu.memory_space<vmem>>, vector<32x128xf32>
    %cst_150 = arith.constant dense<0.000000e+00> : vector<32xf32>
    %302 = vector.multi_reduction <add>, %299, %cst_150 [1] : vector<32x128xf32> to vector<32xf32>
    %303 = vector.shape_cast %302 : vector<32xf32> to vector<32x1xf32>
    %cst_151 = arith.constant 1.280000e+02 : f32
    %304 = vector.broadcast %cst_151 : f32 to vector<32x1xf32>
    %305 = arith.divf %303, %304 : vector<32x1xf32>
    %306 = vector.broadcast %305 : vector<32x1xf32> to vector<32x128xf32>
    %307 = arith.subf %299, %306 : vector<32x128xf32>
    %308 = arith.mulf %307, %307 : vector<32x128xf32>
    %cst_152 = arith.constant dense<0.000000e+00> : vector<32xf32>
    %309 = vector.multi_reduction <add>, %308, %cst_152 [1] : vector<32x128xf32> to vector<32xf32>
    %310 = vector.shape_cast %309 : vector<32xf32> to vector<32x1xf32>
    %cst_153 = arith.constant 1.280000e+02 : f32
    %311 = vector.broadcast %cst_153 : f32 to vector<32x1xf32>
    %312 = arith.divf %310, %311 : vector<32x1xf32>
    %cst_154 = arith.constant 9.99999974E-6 : f32
    %313 = vector.broadcast %cst_154 : f32 to vector<32x1xf32>
    %314 = arith.addf %312, %313 : vector<32x1xf32>
    %315 = math.rsqrt %314 : vector<32x1xf32>
    %316 = vector.broadcast %315 : vector<32x1xf32> to vector<32x128xf32>
    %317 = arith.mulf %307, %316 : vector<32x128xf32>
    %318 = arith.mulf %300, %317 : vector<32x128xf32>
    %319 = arith.addf %318, %301 : vector<32x128xf32>
    %cst_155 = arith.constant 0.000000e+00 : f32
    %320 = vector.broadcast %cst_155 : f32 to vector<32x128xf32>
    %321 = arith.maximumf %319, %320 : vector<32x128xf32>
    %c0_156 = arith.constant 0 : index
    %c0_157 = arith.constant 0 : index
    %322 = vector.load %arg4[%c0_156, %c0_157] : memref<2x32xf32, #tpu.memory_space<vmem>>, vector<1x32xf32>
    %c1_158 = arith.constant 1 : index
    %c0_159 = arith.constant 0 : index
    %323 = vector.load %arg4[%c1_158, %c0_159] : memref<2x32xf32, #tpu.memory_space<vmem>>, vector<1x1xf32>
    %cst_160 = arith.constant dense<0.000000e+00> : vector<1x128xf32>
    %324 = tpu.matmul %322, %321, %cst_160 {dimension_numbers = #tpu.dot_dimension_numbers<[1], [0], [0], [1], [0, 0, 1, 1], [], []>} : vector<1x32xf32>, vector<32x128xf32>, vector<1x128xf32> -> vector<1x128xf32>
    %325 = vector.broadcast %323 : vector<1x1xf32> to vector<1x128xf32>
    %326 = arith.addf %324, %325 : vector<1x128xf32>
    %c0_161 = arith.constant 0 : index
    %c0_162 = arith.constant 0 : index
    %327 = vector.load %arg5[%c0_161, %c0_162] : memref<1x128xf32, #tpu.memory_space<vmem>>, vector<1x128xf32>
    tpu.vector_store %arg5[%c0_161, %c0_162], %326 {strides = array<i32>} : memref<1x128xf32, #tpu.memory_space<vmem>>, vector<1x128xf32>,
    return
  }
}

</mosaic_0001>

<bundles_post_ra>
// kernel: decoder_forward.1
= control target key start
LH: loop header
LB: loop body
LE: loop exit
PB: predicated region body
PF: predicated region fallthrough
CT: control target
= control target key end

     0   :  { %vm391_vm0 = vcmask 1043456   ;;  %vm114_vm1 = vcmask 97280   ;;  %vm1109_vm2 = vcmask 261120   ;;  %v3870_v59 = vmov 0   ;;  %s4759_s0 = inlined_call_operand.vmem [shape: f32[12,128], index: 0, kind: input, shape index: {}]   ;;  %s4760_s1 = inlined_call_operand.vmem [shape: f32[736,12], index: 1, kind: input, shape index: {}]   ;;  %s4761_s2 = inlined_call_operand.vmem [shape: f32[10,32,32], index: 2, kind: input, shape index: {}]   ;;  %s4762_s3 = inlined_call_operand.vmem [shape: f32[10,32,1], index: 3, kind: input, shape index: {}]   ;;  %s4763_s4 = inlined_call_operand.vmem [shape: f32[2,32], index: 4, kind: input, shape index: {}]   ;;  %s4764_s5 = inlined_call_operand.vmem [shape: f32[1,128], index: 5, kind: output, shape index: {}]  }
   0x1   :  { %v113_v0 = vld [vmem:[%s4759_s0 + $0x8] sm:$0xf]  ;;  %v112_v1 = vld [vmem:[%s4759_s0] sm:$0xff]  ;;  %v22_v4 = vld [vmem:[%s4760_s1 + $0x10] sm:$0xff]  ;;  %3781 = vset.pattern.permute.xlu1 %v3870_v59  ;;  %3780 = vset.pattern.permute.xlu0 %v3870_v59  ;;  %vm3872_vm3 = vmmov 0  }
   0x2   :  { %v20_v2 = vld [vmem:[%s4760_s1] sm:$0xff]  ;;  %3480 = vmatprep.subr.msk.mxu0 %vm391_vm0, %v113_v0  ;;  %v21_v3 = vld [vmem:[%s4760_s1 + $0x8] sm:$0xff]  ;;  %3773 = vmatprep.subr.msk.mxu1 %vm391_vm0, %v113_v0  ;;  %v23_v5 = vld [vmem:[%s4760_s1 + $0x18] sm:$0xff] }
   0x3   :  { %3484 = vmatprep.mubr.msk.f32.mxu0 %vm114_vm1, %v20_v2  ;;  %3481 = vmatpush3.msk.msra.mxu0 %vm391_vm0, %v113_v0  ;;  %v24_v6 = vld [vmem:[%s4760_s1 + $0x20] sm:$0xff]  ;;  %v25_v7 = vld [vmem:[%s4760_s1 + $0x28] sm:$0xff]  ;;  %v26_v8 = vld [vmem:[%s4760_s1 + $0x30] sm:$0xff] }
   0x4   :  { %3482 = vmatprep.subr.mxu0 %v112_v1  ;;  %3775 = vmatpush3.msk.msra.mxu1 %vm391_vm0, %v113_v0  ;;  %v27_v9 = vld [vmem:[%s4760_s1 + $0x38] sm:$0xff]  ;;  %v28_v10 = vld [vmem:[%s4760_s1 + $0x40] sm:$0xff]  ;;  %v29_v11 = vld [vmem:[%s4760_s1 + $0x48] sm:$0xff] }
   0x5   :  { %3483 = vmatpush3.msra.mxu0 %v112_v1  ;;  %3774 = vmatprep.subr.mxu1 %v112_v1  ;;  %v30_v12 = vld [vmem:[%s4760_s1 + $0x50] sm:$0xff]  ;;  %v31_v13 = vld [vmem:[%s4760_s1 + $0x58] sm:$0xff]  ;;  %v88_v18 = vld [vmem:[%s4760_s1 + $0x220] sm:$0xff] }
   0x6   :  { %3485 = vmatmul.mubr.msk.f32.vlgmr.msra.gmra.mxu0 %vm114_vm1, %v21_v3  ;;  %3776 = vmatpush3.msra.mxu1 %v112_v1  ;;  %v89_v19 = vld [vmem:[%s4760_s1 + $0x228] sm:$0xff]  ;;  %v90_v20 = vld [vmem:[%s4760_s1 + $0x230] sm:$0xff]  ;;  %v91_v21 = vld [vmem:[%s4760_s1 + $0x238] sm:$0xff] }
   0x7   :  { %3487 = vmatprep.mubr.msk.f32.mxu0 %vm114_vm1, %v22_v4  ;;  %3586 = vmatprep.mubr.msk.f32.mxu1 %vm114_vm1, %v88_v18  ;;  %v92_v22 = vld [vmem:[%s4760_s1 + $0x240] sm:$0xff]  ;;  %v93_v23 = vld [vmem:[%s4760_s1 + $0x248] sm:$0xff]  ;;  %v94_v24 = vld [vmem:[%s4760_s1 + $0x250] sm:$0xff] }
   0x8   :  { %3587 = vmatmul.mubr.msk.f32.vlgmr.msra.gmra.mxu1 %vm114_vm1, %v89_v19  ;;  %v95_v41 = vld [vmem:[%s4760_s1 + $0x258] sm:$0xff]  ;;  %v96_v42 = vld [vmem:[%s4760_s1 + $0x260] sm:$0xff]  ;;  %v97_v43 = vld [vmem:[%s4760_s1 + $0x268] sm:$0xff] }
   0x9   :  { %3589 = vmatprep.mubr.msk.f32.mxu1 %vm114_vm1, %v90_v20  ;;  %v98_v44 = vld [vmem:[%s4760_s1 + $0x270] sm:$0xff]  ;;  %v99_v45 = vld [vmem:[%s4760_s1 + $0x278] sm:$0xff]  ;;  %v100_v46 = vld [vmem:[%s4760_s1 + $0x280] sm:$0xff] }
   0xa   :  { %3488 = vmatmul.mubr.msk.f32.gmra.mxu0 %vm114_vm1, %v23_v5  ;;  %v101_v47 = vld [vmem:[%s4760_s1 + $0x288] sm:$0xff]  ;;  %v102_v48 = vld [vmem:[%s4760_s1 + $0x290] sm:$0xff]  ;;  %v103_v49 = vld [vmem:[%s4760_s1 + $0x298] sm:$0xff] }
   0xb   :  { %3490 = vmatprep.mubr.msk.f32.mxu0 %vm114_vm1, %v24_v6  ;;  %v104_v50 = vld [vmem:[%s4760_s1 + $0x2a0] sm:$0xff]  ;;  %v105_v51 = vld [vmem:[%s4760_s1 + $0x2a8] sm:$0xff]  ;;  %v106_v52 = vld [vmem:[%s4760_s1 + $0x2b0] sm:$0xff] }
   0xc   :  { %3590 = vmatmul.mubr.msk.f32.gmra.mxu1 %vm114_vm1, %v91_v21  ;;  %v107_v53 = vld [vmem:[%s4760_s1 + $0x2b8] sm:$0xff]  ;;  %v108_v54 = vld [vmem:[%s4760_s1 + $0x2c0] sm:$0xff]  ;;  %v109_v55 = vld [vmem:[%s4760_s1 + $0x2c8] sm:$0xff] }
   0xd   :  { %3592 = vmatprep.mubr.msk.f32.mxu1 %vm114_vm1, %v92_v22  ;;  %v110_v56 = vld [vmem:[%s4760_s1 + $0x2d0] sm:$0xff]  ;;  %v111_v57 = vld [vmem:[%s4760_s1 + $0x2d8] sm:$0xff]  ;;  %v1081_v58 = vld [vmem:[%s4761_s2] sm:$0xff] }
   0xe   :  { %3491 = vmatmul.mubr.msk.f32.gmra.mxu0 %vm114_vm1, %v25_v7  ;;  %v1088_v60 = vld [vmem:[%s4762_s3 + $0x18] sm:$0xff]  ;;  %v1087_v61 = vld [vmem:[%s4762_s3 + $0x10] sm:$0xff]  ;;  %v1086_v62 = vld [vmem:[%s4762_s3 + $0x8] sm:$0xff] }
   0xf   :  { %3493 = vmatprep.mubr.msk.f32.mxu0 %vm114_vm1, %v26_v8  ;;  %v1085_v63 = vld [vmem:[%s4762_s3] sm:$0xff] }
  0x10   :  { %3593 = vmatmul.mubr.msk.f32.gmra.mxu1 %vm114_vm1, %v93_v23 }
  0x11   :  { %3595 = vmatprep.mubr.msk.f32.mxu1 %vm114_vm1, %v94_v24 }
  0x12   :  { %3494 = vmatmul.mubr.msk.f32.gmra.mxu0 %vm114_vm1, %v27_v9 }
  0x13   :  { %3496 = vmatprep.mubr.msk.f32.mxu0 %vm114_vm1, %v28_v10 }
  0x14   :  { %3596 = vmatmul.mubr.msk.f32.gmra.mxu1 %vm114_vm1, %v95_v41 }
  0x15   :  { %3598 = vmatprep.mubr.msk.f32.mxu1 %vm114_vm1, %v96_v42 }
  0x16   :  { %3497 = vmatmul.mubr.msk.f32.gmra.mxu0 %vm114_vm1, %v29_v11 }
  0x17   :  { %3499 = vmatprep.mubr.msk.f32.mxu0 %vm114_vm1, %v30_v12 }
  0x18   :  { %3599 = vmatmul.mubr.msk.f32.gmra.mxu1 %vm114_vm1, %v97_v43 }
  0x19   :  { %3601 = vmatprep.mubr.msk.f32.mxu1 %vm114_vm1, %v98_v44 }
  0x1a   :  { %3500 = vmatmul.mubr.msk.f32.gmra.mxu0 %vm114_vm1, %v31_v13 }
  0x1c   :  { %3602 = vmatmul.mubr.msk.f32.gmra.mxu1 %vm114_vm1, %v99_v45 }
  0x1d   :  { %3604 = vmatprep.mubr.msk.f32.mxu1 %vm114_vm1, %v100_v46  ;;  %v1084_v46 = vld [vmem:[%s4761_s2 + $0x18] sm:$0xff] }
  0x20   :  { %3605 = vmatmul.mubr.msk.f32.gmra.mxu1 %vm114_vm1, %v101_v47  ;;  %v32_v47 = vld [vmem:[%s4760_s1 + $0x60] sm:$0xff] }
  0x21   :  { %3607 = vmatprep.mubr.msk.f32.mxu1 %vm114_vm1, %v102_v48  ;;  %v33_v48 = vld [vmem:[%s4760_s1 + $0x68] sm:$0xff]  ;;  %3502 = vmatprep.mubr.msk.f32.mxu0 %vm114_vm1, %v32_v47  ;;  %v3198_v47 = vld [vmem:[%s4762_s3 + $0x30] sm:$0xff] }
  0x22   :  { %3503 = vmatmul.mubr.msk.f32.gmra.mxu0 %vm114_vm1, %v33_v48  ;;  %v3199_v48 = vld [vmem:[%s4762_s3 + $0x38] sm:$0xff] }
  0x24   :  { %3608 = vmatmul.mubr.msk.f32.gmra.mxu1 %vm114_vm1, %v103_v49  ;;  %v34_v49 = vld [vmem:[%s4760_s1 + $0x70] sm:$0xff] }
  0x25   :  { %3610 = vmatprep.mubr.msk.f32.mxu1 %vm114_vm1, %v104_v50  ;;  %3505 = vmatprep.mubr.msk.f32.mxu0 %vm114_vm1, %v34_v49  ;;  %v35_v50 = vld [vmem:[%s4760_s1 + $0x78] sm:$0xff]  ;;  %v3197_v49 = vld [vmem:[%s4762_s3 + $0x28] sm:$0xff] }
  0x26   :  { %3506 = vmatmul.mubr.msk.f32.gmra.mxu0 %vm114_vm1, %v35_v50  ;;  %v3196_v50 = vld [vmem:[%s4762_s3 + $0x20] sm:$0xff] }
  0x28   :  { %3611 = vmatmul.mubr.msk.f32.gmra.mxu1 %vm114_vm1, %v105_v51  ;;  %v36_v51 = vld [vmem:[%s4760_s1 + $0x80] sm:$0xff] }
  0x29   :  { %3613 = vmatprep.mubr.msk.f32.mxu1 %vm114_vm1, %v106_v52  ;;  %3508 = vmatprep.mubr.msk.f32.mxu0 %vm114_vm1, %v36_v51  ;;  %v37_v52 = vld [vmem:[%s4760_s1 + $0x88] sm:$0xff]  ;;  %v3192_v51 = vld [vmem:[%s4761_s2 + $0x20] sm:$0xff] }
  0x2a   :  { %3509 = vmatmul.mubr.msk.f32.gmra.mxu0 %vm114_vm1, %v37_v52 }
  0x2c   :  { %3614 = vmatmul.mubr.msk.f32.gmra.mxu1 %vm114_vm1, %v107_v53  ;;  %v38_v53 = vld [vmem:[%s4760_s1 + $0x90] sm:$0xff] }
  0x2d   :  { %3616 = vmatprep.mubr.msk.f32.mxu1 %vm114_vm1, %v108_v54  ;;  %3511 = vmatprep.mubr.msk.f32.mxu0 %vm114_vm1, %v38_v53  ;;  %v39_v54 = vld [vmem:[%s4760_s1 + $0x98] sm:$0xff] }
  0x2e   :  { %3512 = vmatmul.mubr.msk.f32.gmra.mxu0 %vm114_vm1, %v39_v54 }
  0x30   :  { %3617 = vmatmul.mubr.msk.f32.gmra.mxu1 %vm114_vm1, %v109_v55 }
  0x31   :  { %3619 = vmatprep.mubr.msk.f32.mxu1 %vm114_vm1, %v110_v56 }
  0x34   :  { %3620 = vmatmul.mubr.msk.f32.gmra.mxu1 %vm114_vm1, %v111_v57 }
  0x35   :  { %3630 = vmatprep.mubr.msk.f32.mxu1 %vm1109_vm2, %v1081_v58 }
  0xc6   :  { %v3957_v14 = vpop.f32.mrf.mxu0 }
  0xc7   :  { %1026 = vadd.xlane.f32.xlu1 %v3957_v14 }
  0xc8   :  { %v3960_v15 = vpop.f32.mrf.mxu0  ;;  %v4149_v55 = vpop.f32.mrf.mxu1 }
  0xca   :  { %v3962_v16 = vpop.f32.mrf.mxu0  ;;  %v4151_v56 = vpop.f32.mrf.mxu1 }
  0xcb   :  { %1024 = vadd.xlane.f32.xlu1 %v3960_v15  ;;  %1030 = vadd.xlane.f32.xlu0 %v3962_v16 }
  0xcc   :  { %v3966_v17 = vpop.f32.mrf.mxu0  ;;  %v4153_v57 = vpop.f32.mrf.mxu1 }
  0xce   :  { %v3492_v0 = vpop.f32.mrf.mxu0  ;;  %v4155_v58 = vpop.f32.mrf.mxu1 }
  0xcf   :  { %1028 = vadd.xlane.f32.xlu0 %v3966_v17 }
  0xd0   :  { %v481_v1 = vpop.f32.mrf.mxu0  ;;  %v4157_v59 = vpop.f32.mrf.mxu1 }
  0xd2   :  { %v3495_v5 = vpop.f32.mrf.mxu0 }
  0xd4   :  { %v491_v13 = vpop.f32.mrf.mxu0 }
  0xd6   :  { %v3498_v20 = vpop.f32.mrf.mxu0 }
  0xd8   :  { %v501_v21 = vpop.f32.mrf.mxu0 }
  0xda   :  { %v3501_v24 = vpop.f32.mrf.mxu0 }
 0x150   :  { %v1027_v25 = vpop.xlane.xlu1 %1026 }
 0x151   :  { %v1034_v27 = vmul.f32 0.0078125, %v1027_v25 }
 0x153   :  { %v4003_v35 = vsub.f32 %v3957_v14, %v1034_v27 }
 0x154   :  { %v1031_v26 = vpop.xlane.xlu0 %1030  ;;  %v1025_v29 = vpop.xlane.xlu1 %1024 }
 0x155   :  { %v1036_v28 = vmul.f32 0.0078125, %v1031_v26  ;;  %v1033_v32 = vmul.f32 0.0078125, %v1025_v29  ;;  %v1042_v37 = vmul.f32 %v4003_v35, %v4003_v35 }
 0x157   :  { %v3998_v30 = vsub.f32 %v3962_v16, %v1036_v28  ;;  %v4013_v39 = vsub.f32 %v3960_v15, %v1033_v32 }
 0x158   :  { %v1029_v31 = vpop.xlane.xlu0 %1028 }
 0x159   :  { %v1035_v33 = vmul.f32 0.0078125, %v1029_v31  ;;  %v1044_v34 = vmul.f32 %v3998_v30, %v3998_v30  ;;  %v1041_v40 = vmul.f32 %v4013_v39, %v4013_v39 }
 0x15b   :  { %1051 = vadd.xlane.f32.xlu0 %v1044_v34  ;;  %v4006_v36 = vsub.f32 %v3966_v17, %v1035_v33 }
 0x15d   :  { %v1043_v38 = vmul.f32 %v4006_v36, %v4006_v36 }
 0x15f   :  { %1047 = vadd.xlane.f32.xlu0 %v1042_v37  ;;  %1049 = vadd.xlane.f32.xlu1 %v1043_v38  ;;  %v511_v38 = vpop.f32.mrf.mxu0 }
 0x161   :  { %v3504_v52 = vpop.f32.mrf.mxu0 }
 0x163   :  { %1045 = vadd.xlane.f32.xlu1 %v1041_v40  ;;  %v521_v53 = vpop.f32.mrf.mxu0 }
 0x174   :  { %1101 = vperm.xlu1 %3781, %v1087_v61  }
 0x175   :  { %1106 = vperm.xlu0 %3780, %v1088_v60   ;;  %v4159_v60 = vpop.f32.mrf.mxu1 }
 0x177   :  { %v4161_v61 = vpop.f32.mrf.mxu1 }
 0x178   :  { %1096 = vperm.xlu1 %3781, %v1086_v62  }
 0x179   :  { %v4163_v62 = vpop.f32.mrf.mxu1 }
 0x17c   :  { %1091 = vperm.xlu1 %3781, %v1085_v63   ;;  %v4165_v63 = vpop.f32.mrf.mxu1 }
 0x1e4   :  { %v1052_v2 = vpop.xlane.xlu0 %1051 }
 0x1e5   :  { %v1056_v3 = vmul.f32 0.0078125, %v1052_v2 }
 0x1e7   :  { %v1060_v4 = vadd.f32 1e-05, %v1056_v3 }
 0x1e8   :  { %v1050_v6 = vpop.xlane.xlu1 %1049  ;;  %v1048_v7 = vpop.xlane.xlu0 %1047 }
 0x1e9   :  { %3782 = vrsqrt.f32 %v1060_v4  ;;  %v1055_v8 = vmul.f32 0.0078125, %v1050_v6  ;;  %v1054_v9 = vmul.f32 0.0078125, %v1048_v7 }
 0x1eb   :  { %v1059_v10 = vadd.f32 1e-05, %v1055_v8  ;;  %v1058_v11 = vadd.f32 1e-05, %v1054_v9 }
 0x1ec   :  { %v1046_v12 = vpop.xlane.xlu1 %1045 }
 0x1ed   :  { %3784 = vrsqrt.f32 %v1059_v10  ;;  %v1053_v18 = vmul.f32 0.0078125, %v1046_v12 }
 0x1ee   :  { %3786 = vrsqrt.f32 %v1058_v11 }
 0x1ef   :  { %v1057_v19 = vadd.f32 1e-05, %v1053_v18 }
 0x1f1   :  { %3788 = vrsqrt.f32 %v1057_v19  ;;  %v1102_v19 = vpop.permute.xlu1 %1101 }
 0x1f6   :  { %v3783_v22 = vpop.eup %3782 }
 0x1f7   :  { %v1068_v23 = vmul.f32 %v3783_v22, %v3998_v30  ;;  %v1107_v22 = vpop.permute.xlu0 %1106 }
 0x1f9   :  { %v1072_v25 = vmul.f32 %v3495_v5, %v1068_v23 }
 0x1fa   :  { %v3785_v26 = vpop.eup %3784 }
 0x1fb   :  { %v3787_v27 = vpop.eup %3786  ;;  %v1067_v28 = vmul.f32 %v3785_v26, %v4006_v36  ;;  %v1076_v29 = vadd.f32 %v3501_v24, %v1072_v25  ;;  %v1097_v24 = vpop.permute.xlu1 %1096 }
 0x1fc   :  { %v1066_v31 = vmul.f32 %v3787_v27, %v4003_v35  ;;  %v1082_v35 = vld [vmem:[%s4761_s2 + $0x8] sm:$0xff] }
 0x1fd   :  { %v1071_v32 = vmul.f32 %v1067_v28, %v491_v13  ;;  %v1080_v33 = vmax.f32 %v1076_v29, 0.0 }
 0x1fe   :  { %v3789_v34 = vpop.eup %3788  ;;  %v1070_v37 = vmul.f32 %v3492_v0, %v1066_v31  ;;  %v4167_v0 = vpop.f32.mrf.mxu1 }
 0x1ff   :  { %v1065_v40 = vmul.f32 %v3789_v34, %v4013_v39  ;;  %v1075_v41 = vadd.f32 %v1071_v32, %v511_v38  ;;  %3622 = vmatprep.subr.mxu1 %v1080_v33  ;;  %v1083_v39 = vld [vmem:[%s4761_s2 + $0x10] sm:$0xff]  ;;  %v1092_v29 = vpop.permute.xlu1 %1091 }
 0x200   :  { %v1074_v42 = vadd.f32 %v3498_v20, %v1070_v37  ;;  %3623 = vmatpush3.msra.mxu1 %v1080_v33 }
 0x201   :  { %v1069_v30 = vmul.f32 %v1065_v40, %v481_v1  ;;  %v1079_v43 = vmax.f32 %v1075_v41, 0.0  ;;  %v4169_v1 = vpop.f32.mrf.mxu1 }
 0x202   :  { %v1078_v44 = vmax.f32 %v1074_v42, 0.0 }
 0x203   :  { %v1073_v45 = vadd.f32 %v1069_v30, %v501_v21  ;;  %3624 = vmatprep.subr.mxu1 %v1079_v43  ;;  %v4171_v2 = vpop.f32.mrf.mxu1 }
 0x204   :  { %3625 = vmatpush3.msra.mxu1 %v1079_v43 }
 0x205   :  { %v1077_v36 = vmax.f32 %v1073_v45, 0.0  ;;  %3626 = vmatprep.subr.mxu1 %v1078_v44  ;;  %v4173_v3 = vpop.f32.mrf.mxu1 }
 0x206   :  { %3627 = vmatpush3.msra.mxu1 %v1078_v44 }
 0x207   :  { %3628 = vmatprep.subr.mxu1 %v1077_v36  ;;  %v4175_v4 = vpop.f32.mrf.mxu1 }
 0x208   :  { %3629 = vmatpush3.msra.mxu1 %v1077_v36 }
 0x209   :  { %3631 = vmatmul.mubr.msk.f32.vlgmr.msra.gmra.mxu1 %vm1109_vm2, %v1082_v35  ;;  %v4177_v5 = vpop.f32.mrf.mxu1 }
 0x20a   :  { %3633 = vmatprep.mubr.msk.f32.mxu1 %vm1109_vm2, %v1083_v39 }
 0x20b   :  { %v4179_v6 = vpop.f32.mrf.mxu1 }
 0x20d   :  { %3634 = vmatmul.mubr.msk.f32.gmra.mxu1 %vm1109_vm2, %v1084_v46  ;;  %v4181_v7 = vpop.f32.mrf.mxu1 }
 0x20e   :  { %3644 = vmatprep.mubr.msk.f32.mxu1 %vm1109_vm2, %v3192_v51 }
 0x20f   :  { %v4183_v8 = vpop.f32.mrf.mxu1 }
 0x211   :  { %v4185_v9 = vpop.f32.mrf.mxu1 }
 0x213   :  { %v4187_v10 = vpop.f32.mrf.mxu1 }
 0x215   :  { %v4189_v11 = vpop.f32.mrf.mxu1 }
 0x217   :  { %v4191_v12 = vpop.f32.mrf.mxu1 }
 0x219   :  { %v4193_v13 = vpop.f32.mrf.mxu1 }
 0x21b   :  { %v4195_v18 = vpop.f32.mrf.mxu1 }
 0x2c9   :  { %v3632_v20 = vpop.f32.mrf.mxu1 }
 0x2ca   :  { %v1194_v28 = vadd.f32 %v3632_v20, %v1097_v24 }
 0x2cb   :  { %v1188_v21 = vpop.f32.mrf.mxu1 }
 0x2cc   :  { %v1189_v31 = vadd.f32 %v1188_v21, %v1092_v29  ;;  %v3507_v21 = vpop.f32.mrf.mxu0 }
 0x2cd   :  { %v3635_v23 = vpop.f32.mrf.mxu1 }
 0x2ce   :  { %v1204_v25 = vadd.f32 %v3635_v23, %v1107_v22  ;;  %v531_v29 = vpop.f32.mrf.mxu0 }
 0x2cf   :  { %v1198_v26 = vpop.f32.mrf.mxu1 }
 0x2d0   :  { %v1199_v27 = vadd.f32 %v1198_v26, %v1102_v19  ;;  %1221 = vadd.xlane.f32.xlu1 %v1204_v25 }
 0x2d2   :  { %1219 = vadd.xlane.f32.xlu0 %v1199_v27 }
 0x2d4   :  { %1217 = vadd.xlane.f32.xlu1 %v1194_v28 }
 0x2d8   :  { %1215 = vadd.xlane.f32.xlu1 %v1189_v31 }
 0x359   :  { %v1222_v32 = vpop.xlane.xlu1 %1221 }
 0x35a   :  { %v1226_v33 = vmul.f32 0.0078125, %v1222_v32 }
 0x35b   :  { %v1220_v34 = vpop.xlane.xlu0 %1219 }
 0x35c   :  { %v1225_v37 = vmul.f32 0.0078125, %v1220_v34  ;;  %v1230_v38 = vsub.f32 %v1204_v25, %v1226_v33  ;;  %v3510_v33 = vpop.f32.mrf.mxu0 }
 0x35d   :  { %v1218_v40 = vpop.xlane.xlu1 %1217 }
 0x35e   :  { %v1224_v41 = vmul.f32 0.0078125, %v1218_v40  ;;  %v1234_v42 = vmul.f32 %v1230_v38, %v1230_v38  ;;  %v1229_v30 = vsub.f32 %v1199_v27, %v1225_v37  ;;  %v541_v34 = vpop.f32.mrf.mxu0 }
 0x360   :  { %1241 = vadd.xlane.f32.xlu1 %v1234_v42  ;;  %v1228_v43 = vsub.f32 %v1194_v28, %v1224_v41  ;;  %v1233_v35 = vmul.f32 %v1229_v30, %v1229_v30  ;;  %v3513_v41 = vpop.f32.mrf.mxu0 }
 0x361   :  { %v1216_v44 = vpop.xlane.xlu1 %1215 }
 0x362   :  { %v1223_v45 = vmul.f32 0.0078125, %v1216_v44  ;;  %v1232_v36 = vmul.f32 %v1228_v43, %v1228_v43 }
 0x364   :  { %1237 = vadd.xlane.f32.xlu0 %v1232_v36  ;;  %1239 = vadd.xlane.f32.xlu1 %v1233_v35  ;;  %v1227_v39 = vsub.f32 %v1189_v31, %v1223_v45 }
 0x366   :  { %v1231_v46 = vmul.f32 %v1227_v39, %v1227_v39 }
 0x368   :  { %1235 = vadd.xlane.f32.xlu1 %v1231_v46 }
 0x379   :  { %1293 = vperm.xlu1 %3781, %v3198_v47  }
 0x37a   :  { %1298 = vperm.xlu0 %3780, %v3199_v48  }
 0x37d   :  { %1288 = vperm.xlu1 %3781, %v3197_v49  }
 0x37e   :  { %1283 = vperm.xlu0 %3780, %v3196_v50  }
 0x3e9   :  { %v1242_v54 = vpop.xlane.xlu1 %1241 }
 0x3ea   :  { %v1246_v19 = vmul.f32 0.0078125, %v1242_v54  ;;  %v551_v54 = vpop.f32.mrf.mxu0 }
 0x3ec   :  { %v1250_v20 = vadd.f32 1e-05, %v1246_v19 }
 0x3ed   :  { %v1238_v22 = vpop.xlane.xlu0 %1237  ;;  %v1240_v23 = vpop.xlane.xlu1 %1239 }
 0x3ee   :  { %3790 = vrsqrt.f32 %v1250_v20  ;;  %v1244_v24 = vmul.f32 0.0078125, %v1238_v22  ;;  %v1245_v25 = vmul.f32 0.0078125, %v1240_v23 }
 0x3f0   :  { %v1248_v26 = vadd.f32 1e-05, %v1244_v24  ;;  %v1249_v27 = vadd.f32 1e-05, %v1245_v25  ;;  %v42_v25 = vld [vmem:[%s4760_s1 + $0xb0] sm:$0xff] }
 0x3f1   :  { %v1236_v28 = vpop.xlane.xlu1 %1235 }
 0x3f2   :  { %3792 = vrsqrt.f32 %v1248_v26  ;;  %v1243_v31 = vmul.f32 0.0078125, %v1236_v28  ;;  %v43_v26 = vld [vmem:[%s4760_s1 + $0xb8] sm:$0xff]  ;;  %v45_v28 = vld [vmem:[%s4760_s1 + $0xc8] sm:$0xff] }
 0x3f3   :  { %3794 = vrsqrt.f32 %v1249_v27  ;;  %v44_v27 = vld [vmem:[%s4760_s1 + $0xc0] sm:$0xff] }
 0x3f4   :  { %v1247_v32 = vadd.f32 1e-05, %v1243_v31  ;;  %v47_v31 = vld [vmem:[%s4760_s1 + $0xd8] sm:$0xff] }
 0x3f6   :  { %3796 = vrsqrt.f32 %v1247_v32  ;;  %v1299_v32 = vpop.permute.xlu0 %1298 }
 0x3fb   :  { %v3791_v37 = vpop.eup %3790 }
 0x3fc   :  { %v1258_v40 = vmul.f32 %v3791_v37, %v1230_v38 }
 0x3fe   :  { %v1262_v42 = vmul.f32 %v3507_v21, %v1258_v40 }
 0x3ff   :  { %v3793_v44 = vpop.eup %3792 }
 0x400   :  { %v3795_v45 = vpop.eup %3794  ;;  %v1256_v36 = vmul.f32 %v3793_v44, %v1228_v43  ;;  %v1266_v35 = vadd.f32 %v3513_v41, %v1262_v42  ;;  %v3194_v43 = vld [vmem:[%s4761_s2 + $0x30] sm:$0xff]  ;;  %v1284_v42 = vpop.permute.xlu0 %1283 }
 0x401   :  { %v1257_v46 = vmul.f32 %v3795_v45, %v1229_v30  ;;  %v3193_v30 = vld [vmem:[%s4761_s2 + $0x28] sm:$0xff] }
 0x402   :  { %v1260_v47 = vmul.f32 %v3504_v52, %v1256_v36  ;;  %v1270_v48 = vmax.f32 %v1266_v35, 0.0  ;;  %v40_v52 = vld [vmem:[%s4760_s1 + $0xa0] sm:$0xff] }
 0x403   :  { %v3797_v49 = vpop.eup %3796  ;;  %v1261_v50 = vmul.f32 %v1257_v46, %v531_v29  ;;  %3514 = vmatprep.mubr.msk.f32.mxu0 %vm114_vm1, %v40_v52  ;;  %v46_v29 = vld [vmem:[%s4760_s1 + $0xd0] sm:$0xff] }
 0x404   :  { %v1255_v51 = vmul.f32 %v3797_v49, %v1227_v39  ;;  %3636 = vmatprep.subr.mxu1 %v1270_v48  ;;  %v1264_v19 = vadd.f32 %v3510_v33, %v1260_v47  ;;  %v3195_v39 = vld [vmem:[%s4761_s2 + $0x38] sm:$0xff]  ;;  %v3210_v52 = vld [vmem:[%s4762_s3 + $0x50] sm:$0xff] }
 0x405   :  { %v1265_v20 = vadd.f32 %v1261_v50, %v551_v54  ;;  %3637 = vmatpush3.msra.mxu1 %v1270_v48 }
 0x406   :  { %v1259_v22 = vmul.f32 %v1255_v51, %v521_v53  ;;  %v1268_v24 = vmax.f32 %v1264_v19, 0.0  ;;  %v41_v53 = vld [vmem:[%s4760_s1 + $0xa8] sm:$0xff] }
 0x407   :  { %v1269_v23 = vmax.f32 %v1265_v20, 0.0  ;;  %3515 = vmatmul.mubr.msk.f32.gmra.mxu0 %vm114_vm1, %v41_v53  ;;  %v3209_v53 = vld [vmem:[%s4762_s3 + $0x48] sm:$0xff] }
 0x408   :  { %v1263_v38 = vadd.f32 %v1259_v22, %v541_v34  ;;  %3517 = vmatprep.mubr.msk.f32.mxu0 %vm114_vm1, %v42_v25  ;;  %v1294_v34 = vpop.permute.xlu1 %1293  ;;  %v3211_v25 = vld [vmem:[%s4762_s3 + $0x58] sm:$0xff] }
 0x409   :  { %3638 = vmatprep.subr.mxu1 %v1269_v23 }
 0x40a   :  { %v1267_v21 = vmax.f32 %v1263_v38, 0.0  ;;  %3639 = vmatpush3.msra.mxu1 %v1269_v23 }
 0x40b   :  { %3640 = vmatprep.subr.mxu1 %v1268_v24  ;;  %3518 = vmatmul.mubr.msk.f32.gmra.mxu0 %vm114_vm1, %v43_v26  ;;  %v3208_v26 = vld [vmem:[%s4762_s3 + $0x40] sm:$0xff] }
 0x40c   :  { %3641 = vmatpush3.msra.mxu1 %v1268_v24  ;;  %3520 = vmatprep.mubr.msk.f32.mxu0 %vm114_vm1, %v44_v27  ;;  %v1289_v46 = vpop.permute.xlu1 %1288  ;;  %v3204_v27 = vld [vmem:[%s4761_s2 + $0x40] sm:$0xff] }
 0x40d   :  { %3642 = vmatprep.subr.mxu1 %v1267_v21 }
 0x40e   :  { %3643 = vmatpush3.msra.mxu1 %v1267_v21 }
 0x40f   :  { %3645 = vmatmul.mubr.msk.f32.vlgmr.msra.gmra.mxu1 %vm1109_vm2, %v3193_v30  ;;  %3521 = vmatmul.mubr.msk.f32.gmra.mxu0 %vm114_vm1, %v45_v28 }
 0x410   :  { %3647 = vmatprep.mubr.msk.f32.mxu1 %vm1109_vm2, %v3194_v43  ;;  %3523 = vmatprep.mubr.msk.f32.mxu0 %vm114_vm1, %v46_v29 }
 0x413   :  { %3648 = vmatmul.mubr.msk.f32.gmra.mxu1 %vm1109_vm2, %v3195_v39  ;;  %3524 = vmatmul.mubr.msk.f32.gmra.mxu0 %vm114_vm1, %v47_v31 }
 0x414   :  { %3658 = vmatprep.mubr.msk.f32.mxu1 %vm1109_vm2, %v3204_v27 }
 0x4c7   :  { %v3516_v28 = vpop.f32.mrf.mxu0 }
 0x4c9   :  { %v561_v29 = vpop.f32.mrf.mxu0 }
 0x4cf   :  { %v3646_v33 = vpop.f32.mrf.mxu1 }
 0x4d0   :  { %v1385_v47 = vadd.f32 %v3646_v33, %v1289_v46  ;;  %v3519_v33 = vpop.f32.mrf.mxu0 }
 0x4d1   :  { %v1379_v37 = vpop.f32.mrf.mxu1 }
 0x4d2   :  { %v1380_v45 = vadd.f32 %v1379_v37, %v1284_v42  ;;  %v4269_v50 = vadd.f32 %v3957_v14, %v1385_v47  ;;  %v571_v42 = vpop.f32.mrf.mxu0 }
 0x4d3   :  { %v3649_v40 = vpop.f32.mrf.mxu1 }
 0x4d4   :  { %v1395_v41 = vadd.f32 %v3649_v40, %v1299_v32  ;;  %v4265_v49 = vadd.f32 %v1380_v45, %v3960_v15 }
 0x4d5   :  { %v1389_v44 = vpop.f32.mrf.mxu1 }
 0x4d6   :  { %v4258_v36 = vadd.f32 %v3962_v16, %v1395_v41  ;;  %v1390_v35 = vadd.f32 %v1389_v44, %v1294_v34 }
 0x4d8   :  { %v4261_v48 = vadd.f32 %v1390_v35, %v3966_v17  ;;  %1416 = vadd.xlane.f32.xlu1 %v4258_v36 }
 0x4da   :  { %1414 = vadd.xlane.f32.xlu0 %v4261_v48 }
 0x4dc   :  { %1410 = vadd.xlane.f32.xlu1 %v4265_v49 }
 0x4de   :  { %1412 = vadd.xlane.f32.xlu0 %v4269_v50 }
 0x561   :  { %v1417_v16 = vpop.xlane.xlu1 %1416 }
 0x562   :  { %v1421_v51 = vmul.f32 0.0078125, %v1417_v16 }
 0x563   :  { %v1415_v54 = vpop.xlane.xlu0 %1414 }
 0x564   :  { %v1420_v19 = vmul.f32 0.0078125, %v1415_v54  ;;  %v1425_v17 = vsub.f32 %v4258_v36, %v1421_v51  ;;  %v3522_v51 = vpop.f32.mrf.mxu0 }
 0x565   :  { %v1411_v20 = vpop.xlane.xlu1 %1410 }
 0x566   :  { %v1418_v22 = vmul.f32 0.0078125, %v1411_v20  ;;  %v1429_v23 = vmul.f32 %v1425_v17, %v1425_v17  ;;  %v1424_v15 = vsub.f32 %v4261_v48, %v1420_v19  ;;  %v581_v54 = vpop.f32.mrf.mxu0 }
 0x567   :  { %v1413_v38 = vpop.xlane.xlu0 %1412 }
 0x568   :  { %v1419_v24 = vmul.f32 0.0078125, %v1413_v38  ;;  %1436 = vadd.xlane.f32.xlu0 %v1429_v23  ;;  %v1428_v14 = vmul.f32 %v1424_v15, %v1424_v15  ;;  %v1422_v21 = vsub.f32 %v4265_v49, %v1418_v22  ;;  %v3525_v20 = vpop.f32.mrf.mxu0 }
 0x56a   :  { %1434 = vadd.xlane.f32.xlu1 %v1428_v14  ;;  %v1423_v30 = vsub.f32 %v4269_v50, %v1419_v24  ;;  %v1426_v39 = vmul.f32 %v1422_v21, %v1422_v21  ;;  %v591_v14 = vpop.f32.mrf.mxu0 }
 0x56c   :  { %v1427_v43 = vmul.f32 %v1423_v30, %v1423_v30 }
 0x56e   :  { %1432 = vadd.xlane.f32.xlu0 %v1427_v43  ;;  %1430 = vadd.xlane.f32.xlu1 %v1426_v39 }
 0x57f   :  { %1488 = vperm.xlu1 %3781, %v3210_v52  }
 0x583   :  { %1483 = vperm.xlu1 %3781, %v3209_v53  }
 0x584   :  { %1493 = vperm.xlu0 %3780, %v3211_v25  }
 0x588   :  { %1478 = vperm.xlu0 %3780, %v3208_v26  }
 0x5f1   :  { %v1437_v31 = vpop.xlane.xlu0 %1436 }
 0x5f2   :  { %v1441_v32 = vmul.f32 0.0078125, %v1437_v31 }
 0x5f3   :  { %v1435_v34 = vpop.xlane.xlu1 %1434 }
 0x5f4   :  { %v1445_v37 = vadd.f32 1e-05, %v1441_v32  ;;  %v1440_v40 = vmul.f32 0.0078125, %v1435_v34 }
 0x5f6   :  { %3798 = vrsqrt.f32 %v1445_v37  ;;  %v1444_v41 = vadd.f32 1e-05, %v1440_v40 }
 0x5f7   :  { %v1433_v44 = vpop.xlane.xlu0 %1432  ;;  %v1431_v45 = vpop.xlane.xlu1 %1430 }
 0x5f8   :  { %3800 = vrsqrt.f32 %v1444_v41  ;;  %v1439_v35 = vmul.f32 0.0078125, %v1433_v44  ;;  %v1438_v46 = vmul.f32 0.0078125, %v1431_v45  ;;  %v49_v41 = vld [vmem:[%s4760_s1 + $0xe8] sm:$0xff]  ;;  %v51_v44 = vld [vmem:[%s4760_s1 + $0xf8] sm:$0xff]  ;;  %v52_v45 = vld [vmem:[%s4760_s1 + $0x100] sm:$0xff] }
 0x5fa   :  { %v1443_v47 = vadd.f32 1e-05, %v1439_v35  ;;  %v1442_v16 = vadd.f32 1e-05, %v1438_v46  ;;  %v53_v35 = vld [vmem:[%s4760_s1 + $0x108] sm:$0xff]  ;;  %v54_v46 = vld [vmem:[%s4760_s1 + $0x110] sm:$0xff] }
 0x5fc   :  { %3802 = vrsqrt.f32 %v1443_v47  ;;  %v55_v47 = vld [vmem:[%s4760_s1 + $0x118] sm:$0xff] }
 0x5fd   :  { %3804 = vrsqrt.f32 %v1442_v16 }
 0x603   :  { %v3799_v19 = vpop.eup %3798 }
 0x604   :  { %v1453_v22 = vmul.f32 %v3799_v19, %v1425_v17  ;;  %v1489_v19 = vpop.permute.xlu1 %1488 }
 0x605   :  { %v3801_v23 = vpop.eup %3800 }
 0x606   :  { %v1457_v38 = vmul.f32 %v3519_v33, %v1453_v22  ;;  %v1452_v24 = vmul.f32 %v3801_v23, %v1424_v15 }
 0x608   :  { %v1456_v43 = vmul.f32 %v1452_v24, %v571_v42  ;;  %v1461_v39 = vadd.f32 %v3525_v20, %v1457_v38  ;;  %v50_v42 = vld [vmem:[%s4760_s1 + $0xf0] sm:$0xff] }
 0x609   :  { %v3803_v52 = vpop.eup %3802 }
 0x60a   :  { %v3805_v53 = vpop.eup %3804  ;;  %v1451_v25 = vmul.f32 %v3803_v52, %v1423_v30  ;;  %v1465_v26 = vmax.f32 %v1461_v39, 0.0  ;;  %v1460_v27 = vadd.f32 %v1456_v43, %v591_v14  ;;  %v3205_v30 = vld [vmem:[%s4761_s2 + $0x48] sm:$0xff]  ;;  %v1484_v43 = vpop.permute.xlu1 %1483 }
 0x60b   :  { %v1450_v31 = vmul.f32 %v3805_v53, %v1422_v21  ;;  %v3206_v21 = vld [vmem:[%s4761_s2 + $0x50] sm:$0xff] }
 0x60c   :  { %v1455_v32 = vmul.f32 %v3516_v28, %v1451_v25  ;;  %v1464_v34 = vmax.f32 %v1460_v27, 0.0  ;;  %3650 = vmatprep.subr.mxu1 %v1465_v26  ;;  %v3207_v28 = vld [vmem:[%s4761_s2 + $0x58] sm:$0xff] }
 0x60d   :  { %v1454_v37 = vmul.f32 %v1450_v31, %v561_v29  ;;  %3651 = vmatpush3.msra.mxu1 %v1465_v26  ;;  %v48_v29 = vld [vmem:[%s4760_s1 + $0xe0] sm:$0xff] }
 0x60e   :  { %v1459_v40 = vadd.f32 %v3522_v51, %v1455_v32  ;;  %3652 = vmatprep.subr.mxu1 %v1464_v34  ;;  %3526 = vmatprep.mubr.msk.f32.mxu0 %vm114_vm1, %v48_v29  ;;  %v1494_v51 = vpop.permute.xlu0 %1493  ;;  %v3222_v29 = vld [vmem:[%s4762_s3 + $0x70] sm:$0xff] }
 0x60f   :  { %v1458_v17 = vadd.f32 %v1454_v37, %v581_v54  ;;  %3653 = vmatpush3.msra.mxu1 %v1464_v34  ;;  %3527 = vmatmul.mubr.msk.f32.gmra.mxu0 %vm114_vm1, %v49_v41  ;;  %v3221_v41 = vld [vmem:[%s4762_s3 + $0x68] sm:$0xff] }
 0x610   :  { %v1463_v33 = vmax.f32 %v1459_v40, 0.0  ;;  %3529 = vmatprep.mubr.msk.f32.mxu0 %vm114_vm1, %v50_v42  ;;  %v3223_v42 = vld [vmem:[%s4762_s3 + $0x78] sm:$0xff] }
 0x611   :  { %v1462_v15 = vmax.f32 %v1458_v17, 0.0 }
 0x612   :  { %3654 = vmatprep.subr.mxu1 %v1463_v33  ;;  %v1479_v24 = vpop.permute.xlu0 %1478 }
 0x613   :  { %3655 = vmatpush3.msra.mxu1 %v1463_v33  ;;  %3530 = vmatmul.mubr.msk.f32.gmra.mxu0 %vm114_vm1, %v51_v44  ;;  %v3220_v44 = vld [vmem:[%s4762_s3 + $0x60] sm:$0xff] }
 0x614   :  { %3656 = vmatprep.subr.mxu1 %v1462_v15  ;;  %3532 = vmatprep.mubr.msk.f32.mxu0 %vm114_vm1, %v52_v45  ;;  %v3216_v45 = vld [vmem:[%s4761_s2 + $0x60] sm:$0xff] }
 0x615   :  { %3657 = vmatpush3.msra.mxu1 %v1462_v15 }
 0x616   :  { %3659 = vmatmul.mubr.msk.f32.vlgmr.msra.gmra.mxu1 %vm1109_vm2, %v3205_v30 }
 0x617   :  { %3661 = vmatprep.mubr.msk.f32.mxu1 %vm1109_vm2, %v3206_v21  ;;  %3533 = vmatmul.mubr.msk.f32.gmra.mxu0 %vm114_vm1, %v53_v35 }
 0x618   :  { %3535 = vmatprep.mubr.msk.f32.mxu0 %vm114_vm1, %v54_v46 }
 0x61a   :  { %3662 = vmatmul.mubr.msk.f32.gmra.mxu1 %vm1109_vm2, %v3207_v28 }
 0x61b   :  { %3536 = vmatmul.mubr.msk.f32.gmra.mxu0 %vm114_vm1, %v55_v47  ;;  %3672 = vmatprep.mubr.msk.f32.mxu1 %vm1109_vm2, %v3216_v45 }
 0x6cf   :  { %v3528_v35 = vpop.f32.mrf.mxu0 }
 0x6d1   :  { %v601_v46 = vpop.f32.mrf.mxu0 }
 0x6d6   :  { %v3660_v16 = vpop.f32.mrf.mxu1 }
 0x6d7   :  { %v1580_v39 = vadd.f32 %v3660_v16, %v1484_v43 }
 0x6d8   :  { %v1574_v54 = vpop.f32.mrf.mxu1 }
 0x6d9   :  { %v1575_v14 = vadd.f32 %v1574_v54, %v1479_v24 }
 0x6da   :  { %v3663_v20 = vpop.f32.mrf.mxu1 }
 0x6db   :  { %v1590_v22 = vadd.f32 %v3663_v20, %v1494_v51  ;;  %v3531_v51 = vpop.f32.mrf.mxu0 }
 0x6dc   :  { %v1584_v23 = vpop.f32.mrf.mxu1 }
 0x6dd   :  { %v1585_v38 = vadd.f32 %v1584_v23, %v1489_v19  ;;  %1607 = vadd.xlane.f32.xlu1 %v1590_v22  ;;  %v611_v23 = vpop.f32.mrf.mxu0 }
 0x6df   :  { %1605 = vadd.xlane.f32.xlu0 %v1585_v38 }
 0x6e1   :  { %1601 = vadd.xlane.f32.xlu1 %v1575_v14 }
 0x6e3   :  { %1603 = vadd.xlane.f32.xlu0 %v1580_v39 }
 0x766   :  { %v1608_v52 = vpop.xlane.xlu1 %1607 }
 0x767   :  { %v1612_v53 = vmul.f32 0.0078125, %v1608_v52 }
 0x768   :  { %v1606_v25 = vpop.xlane.xlu0 %1605 }
 0x769   :  { %v1616_v26 = vsub.f32 %v1590_v22, %v1612_v53  ;;  %v1611_v27 = vmul.f32 0.0078125, %v1606_v25  ;;  %v3534_v53 = vpop.f32.mrf.mxu0 }
 0x76a   :  { %v1602_v31 = vpop.xlane.xlu1 %1601 }
 0x76b   :  { %v1615_v32 = vsub.f32 %v1585_v38, %v1611_v27  ;;  %v1609_v34 = vmul.f32 0.0078125, %v1602_v31  ;;  %v1620_v37 = vmul.f32 %v1616_v26, %v1616_v26  ;;  %v621_v25 = vpop.f32.mrf.mxu0 }
 0x76c   :  { %v1604_v40 = vpop.xlane.xlu0 %1603 }
 0x76d   :  { %v1613_v17 = vsub.f32 %v1575_v14, %v1609_v34  ;;  %v1610_v33 = vmul.f32 0.0078125, %v1604_v40  ;;  %1627 = vadd.xlane.f32.xlu0 %v1620_v37  ;;  %v1619_v15 = vmul.f32 %v1615_v32, %v1615_v32  ;;  %v3537_v31 = vpop.f32.mrf.mxu0 }
 0x76f   :  { %v1614_v30 = vsub.f32 %v1580_v39, %v1610_v33  ;;  %1625 = vadd.xlane.f32.xlu1 %v1619_v15  ;;  %v1617_v28 = vmul.f32 %v1613_v17, %v1613_v17  ;;  %v631_v15 = vpop.f32.mrf.mxu0 }
 0x771   :  { %v1618_v21 = vmul.f32 %v1614_v30, %v1614_v30 }
 0x773   :  { %1623 = vadd.xlane.f32.xlu0 %v1618_v21  ;;  %1621 = vadd.xlane.f32.xlu1 %v1617_v28 }
 0x784   :  { %1679 = vperm.xlu1 %3781, %v3222_v29  }
 0x788   :  { %1674 = vperm.xlu1 %3781, %v3221_v41  }
 0x789   :  { %1684 = vperm.xlu0 %3780, %v3223_v42  }
 0x78d   :  { %1669 = vperm.xlu0 %3780, %v3220_v44  }
 0x7f6   :  { %v1628_v47 = vpop.xlane.xlu0 %1627 }
 0x7f7   :  { %v1632_v16 = vmul.f32 0.0078125, %v1628_v47 }
 0x7f8   :  { %v1626_v54 = vpop.xlane.xlu1 %1625 }
 0x7f9   :  { %v1636_v19 = vadd.f32 1e-05, %v1632_v16  ;;  %v1631_v20 = vmul.f32 0.0078125, %v1626_v54 }
 0x7fb   :  { %3806 = vrsqrt.f32 %v1636_v19  ;;  %v1635_v22 = vadd.f32 1e-05, %v1631_v20 }
 0x7fc   :  { %v1624_v38 = vpop.xlane.xlu0 %1623  ;;  %v1622_v24 = vpop.xlane.xlu1 %1621 }
 0x7fd   :  { %3808 = vrsqrt.f32 %v1635_v22  ;;  %v1630_v14 = vmul.f32 0.0078125, %v1624_v38  ;;  %v1629_v43 = vmul.f32 0.0078125, %v1622_v24  ;;  %v57_v22 = vld [vmem:[%s4760_s1 + $0x128] sm:$0xff]  ;;  %v59_v38 = vld [vmem:[%s4760_s1 + $0x138] sm:$0xff]  ;;  %v60_v24 = vld [vmem:[%s4760_s1 + $0x140] sm:$0xff] }
 0x7ff   :  { %v1634_v39 = vadd.f32 1e-05, %v1630_v14  ;;  %v1633_v52 = vadd.f32 1e-05, %v1629_v43  ;;  %v61_v14 = vld [vmem:[%s4760_s1 + $0x148] sm:$0xff]  ;;  %v62_v43 = vld [vmem:[%s4760_s1 + $0x150] sm:$0xff] }
 0x801   :  { %3810 = vrsqrt.f32 %v1634_v39  ;;  %v63_v39 = vld [vmem:[%s4760_s1 + $0x158] sm:$0xff] }
 0x802   :  { %3812 = vrsqrt.f32 %v1633_v52 }
 0x804   :  { %v1685_v52 = vpop.permute.xlu0 %1684 }
 0x808   :  { %v3807_v27 = vpop.eup %3806 }
 0x809   :  { %v1644_v34 = vmul.f32 %v3807_v27, %v1616_v26 }
 0x80a   :  { %v3809_v37 = vpop.eup %3808 }
 0x80b   :  { %v1648_v40 = vmul.f32 %v3531_v51, %v1644_v34  ;;  %v1643_v33 = vmul.f32 %v3809_v37, %v1615_v32  ;;  %v1670_v37 = vpop.permute.xlu0 %1669 }
 0x80d   :  { %v1647_v21 = vmul.f32 %v1643_v33, %v611_v23  ;;  %v1652_v28 = vadd.f32 %v3537_v31, %v1648_v40  ;;  %v58_v23 = vld [vmem:[%s4760_s1 + $0x130] sm:$0xff] }
 0x80e   :  { %v3811_v29 = vpop.eup %3810 }
 0x80f   :  { %v3813_v41 = vpop.eup %3812  ;;  %v1642_v42 = vmul.f32 %v3811_v29, %v1614_v30  ;;  %v1656_v44 = vmax.f32 %v1652_v28, 0.0  ;;  %v1651_v45 = vadd.f32 %v1647_v21, %v631_v15  ;;  %v3217_v30 = vld [vmem:[%s4761_s2 + $0x68] sm:$0xff] }
 0x810   :  { %v1641_v47 = vmul.f32 %v3813_v41, %v1613_v17  ;;  %v3218_v17 = vld [vmem:[%s4761_s2 + $0x70] sm:$0xff] }
 0x811   :  { %v1646_v16 = vmul.f32 %v3528_v35, %v1642_v42  ;;  %v1655_v54 = vmax.f32 %v1651_v45, 0.0  ;;  %3664 = vmatprep.subr.mxu1 %v1656_v44  ;;  %v3219_v35 = vld [vmem:[%s4761_s2 + $0x78] sm:$0xff] }
 0x812   :  { %v1645_v19 = vmul.f32 %v1641_v47, %v601_v46  ;;  %3665 = vmatpush3.msra.mxu1 %v1656_v44  ;;  %v56_v46 = vld [vmem:[%s4760_s1 + $0x120] sm:$0xff] }
 0x813   :  { %v1650_v20 = vadd.f32 %v3534_v53, %v1646_v16  ;;  %3666 = vmatprep.subr.mxu1 %v1655_v54  ;;  %3538 = vmatprep.mubr.msk.f32.mxu0 %vm114_vm1, %v56_v46  ;;  %v3234_v46 = vld [vmem:[%s4762_s3 + $0x90] sm:$0xff] }
 0x814   :  { %v1649_v26 = vadd.f32 %v1645_v19, %v621_v25  ;;  %3667 = vmatpush3.msra.mxu1 %v1655_v54  ;;  %3539 = vmatmul.mubr.msk.f32.gmra.mxu0 %vm114_vm1, %v57_v22  ;;  %v1680_v25 = vpop.permute.xlu1 %1679  ;;  %v3233_v22 = vld [vmem:[%s4762_s3 + $0x88] sm:$0xff] }
 0x815   :  { %v1654_v51 = vmax.f32 %v1650_v20, 0.0  ;;  %3541 = vmatprep.mubr.msk.f32.mxu0 %vm114_vm1, %v58_v23  ;;  %v3235_v23 = vld [vmem:[%s4762_s3 + $0x98] sm:$0xff] }
 0x816   :  { %v1653_v32 = vmax.f32 %v1649_v26, 0.0 }
 0x817   :  { %3668 = vmatprep.subr.mxu1 %v1654_v51 }
 0x818   :  { %3669 = vmatpush3.msra.mxu1 %v1654_v51  ;;  %3542 = vmatmul.mubr.msk.f32.gmra.mxu0 %vm114_vm1, %v59_v38  ;;  %v1675_v28 = vpop.permute.xlu1 %1674  ;;  %v3232_v38 = vld [vmem:[%s4762_s3 + $0x80] sm:$0xff] }
 0x819   :  { %3670 = vmatprep.subr.mxu1 %v1653_v32  ;;  %3544 = vmatprep.mubr.msk.f32.mxu0 %vm114_vm1, %v60_v24  ;;  %v3228_v24 = vld [vmem:[%s4761_s2 + $0x80] sm:$0xff] }
 0x81a   :  { %3671 = vmatpush3.msra.mxu1 %v1653_v32 }
 0x81b   :  { %3673 = vmatmul.mubr.msk.f32.vlgmr.msra.gmra.mxu1 %vm1109_vm2, %v3217_v30 }
 0x81c   :  { %3675 = vmatprep.mubr.msk.f32.mxu1 %vm1109_vm2, %v3218_v17  ;;  %3545 = vmatmul.mubr.msk.f32.gmra.mxu0 %vm114_vm1, %v61_v14 }
 0x81d   :  { %3547 = vmatprep.mubr.msk.f32.mxu0 %vm114_vm1, %v62_v43 }
 0x81f   :  { %3676 = vmatmul.mubr.msk.f32.gmra.mxu1 %vm1109_vm2, %v3219_v35 }
 0x820   :  { %3548 = vmatmul.mubr.msk.f32.gmra.mxu0 %vm114_vm1, %v63_v39  ;;  %3686 = vmatprep.mubr.msk.f32.mxu1 %vm1109_vm2, %v3228_v24 }
 0x8d4   :  { %v3540_v14 = vpop.f32.mrf.mxu0 }
 0x8d6   :  { %v641_v43 = vpop.f32.mrf.mxu0 }
 0x8db   :  { %v3674_v53 = vpop.f32.mrf.mxu1 }
 0x8dc   :  { %v1771_v29 = vadd.f32 %v3674_v53, %v1675_v28  ;;  %v3543_v53 = vpop.f32.mrf.mxu0 }
 0x8dd   :  { %v1765_v27 = vpop.f32.mrf.mxu1 }
 0x8de   :  { %v1766_v33 = vadd.f32 %v1765_v27, %v1670_v37  ;;  %v4409_v44 = vadd.f32 %v1771_v29, %v4269_v50  ;;  %v651_v37 = vpop.f32.mrf.mxu0 }
 0x8df   :  { %v3677_v31 = vpop.f32.mrf.mxu1 }
 0x8e0   :  { %v1781_v34 = vadd.f32 %v3677_v31, %v1685_v52  ;;  %v4405_v42 = vadd.f32 %v1766_v33, %v4265_v49 }
 0x8e1   :  { %v1775_v40 = vpop.f32.mrf.mxu1 }
 0x8e2   :  { %v4398_v15 = vadd.f32 %v1781_v34, %v4258_v36  ;;  %v1776_v21 = vadd.f32 %v1775_v40, %v1680_v25 }
 0x8e4   :  { %v4401_v41 = vadd.f32 %v1776_v21, %v4261_v48  ;;  %1802 = vadd.xlane.f32.xlu1 %v4398_v15 }
 0x8e6   :  { %1800 = vadd.xlane.f32.xlu0 %v4401_v41 }
 0x8e8   :  { %1796 = vadd.xlane.f32.xlu1 %v4405_v42 }
 0x8ea   :  { %1798 = vadd.xlane.f32.xlu0 %v4409_v44 }
 0x96d   :  { %v1803_v36 = vpop.xlane.xlu1 %1802 }
 0x96e   :  { %v1807_v45 = vmul.f32 0.0078125, %v1803_v36 }
 0x96f   :  { %v1801_v47 = vpop.xlane.xlu0 %1800 }
 0x970   :  { %v1811_v48 = vsub.f32 %v4398_v15, %v1807_v45  ;;  %v1806_v16 = vmul.f32 0.0078125, %v1801_v47  ;;  %v3546_v45 = vpop.f32.mrf.mxu0 }
 0x971   :  { %v1797_v54 = vpop.xlane.xlu1 %1796 }
 0x972   :  { %v1810_v19 = vsub.f32 %v4401_v41, %v1806_v16  ;;  %v1804_v49 = vmul.f32 0.0078125, %v1797_v54  ;;  %v1815_v20 = vmul.f32 %v1811_v48, %v1811_v48  ;;  %v661_v47 = vpop.f32.mrf.mxu0 }
 0x973   :  { %v1799_v26 = vpop.xlane.xlu0 %1798 }
 0x974   :  { %v1808_v51 = vsub.f32 %v4405_v42, %v1804_v49  ;;  %v1805_v50 = vmul.f32 0.0078125, %v1799_v26  ;;  %1822 = vadd.xlane.f32.xlu0 %v1815_v20  ;;  %v1814_v32 = vmul.f32 %v1810_v19, %v1810_v19  ;;  %v3549_v54 = vpop.f32.mrf.mxu0 }
 0x976   :  { %v1809_v30 = vsub.f32 %v4409_v44, %v1805_v50  ;;  %1820 = vadd.xlane.f32.xlu1 %v1814_v32  ;;  %v1812_v35 = vmul.f32 %v1808_v51, %v1808_v51  ;;  %v671_v32 = vpop.f32.mrf.mxu0 }
 0x978   :  { %v1813_v17 = vmul.f32 %v1809_v30, %v1809_v30 }
 0x97a   :  { %1818 = vadd.xlane.f32.xlu0 %v1813_v17  ;;  %1816 = vadd.xlane.f32.xlu1 %v1812_v35 }
 0x98b   :  { %1874 = vperm.xlu1 %3781, %v3234_v46  }
 0x98f   :  { %1869 = vperm.xlu1 %3781, %v3233_v22  }
 0x990   :  { %1879 = vperm.xlu0 %3780, %v3235_v23  }
 0x994   :  { %1864 = vperm.xlu0 %3780, %v3232_v38  }
 0x9fd   :  { %v1823_v39 = vpop.xlane.xlu0 %1822 }
 0x9fe   :  { %v1827_v52 = vmul.f32 0.0078125, %v1823_v39 }
 0x9ff   :  { %v1821_v25 = vpop.xlane.xlu1 %1820 }
 0xa00   :  { %v1831_v27 = vadd.f32 1e-05, %v1827_v52  ;;  %v1826_v31 = vmul.f32 0.0078125, %v1821_v25 }
 0xa02   :  { %3814 = vrsqrt.f32 %v1831_v27  ;;  %v1830_v34 = vadd.f32 1e-05, %v1826_v31 }
 0xa03   :  { %v1819_v40 = vpop.xlane.xlu0 %1818  ;;  %v1817_v33 = vpop.xlane.xlu1 %1816 }
 0xa04   :  { %3816 = vrsqrt.f32 %v1830_v34  ;;  %v1825_v21 = vmul.f32 0.0078125, %v1819_v40  ;;  %v1824_v28 = vmul.f32 0.0078125, %v1817_v33  ;;  %v65_v34 = vld [vmem:[%s4760_s1 + $0x168] sm:$0xff]  ;;  %v67_v40 = vld [vmem:[%s4760_s1 + $0x178] sm:$0xff]  ;;  %v68_v33 = vld [vmem:[%s4760_s1 + $0x180] sm:$0xff] }
 0xa06   :  { %v1829_v29 = vadd.f32 1e-05, %v1825_v21  ;;  %v1828_v36 = vadd.f32 1e-05, %v1824_v28  ;;  %v69_v21 = vld [vmem:[%s4760_s1 + $0x188] sm:$0xff]  ;;  %v70_v28 = vld [vmem:[%s4760_s1 + $0x190] sm:$0xff] }
 0xa08   :  { %3818 = vrsqrt.f32 %v1829_v29  ;;  %v71_v29 = vld [vmem:[%s4760_s1 + $0x198] sm:$0xff] }
 0xa09   :  { %3820 = vrsqrt.f32 %v1828_v36 }
 0xa0f   :  { %v3815_v16 = vpop.eup %3814 }
 0xa10   :  { %v1839_v49 = vmul.f32 %v3815_v16, %v1811_v48  ;;  %v1875_v16 = vpop.permute.xlu1 %1874 }
 0xa11   :  { %v3817_v20 = vpop.eup %3816 }
 0xa12   :  { %v1843_v26 = vmul.f32 %v3543_v53, %v1839_v49  ;;  %v1838_v50 = vmul.f32 %v3817_v20, %v1810_v19 }
 0xa14   :  { %v1842_v17 = vmul.f32 %v1838_v50, %v651_v37  ;;  %v1847_v35 = vadd.f32 %v3549_v54, %v1843_v26  ;;  %v66_v37 = vld [vmem:[%s4760_s1 + $0x170] sm:$0xff] }
 0xa15   :  { %v3819_v46 = vpop.eup %3818 }
 0xa16   :  { %v3821_v22 = vpop.eup %3820  ;;  %v1837_v23 = vmul.f32 %v3819_v46, %v1809_v30  ;;  %v1851_v38 = vmax.f32 %v1847_v35, 0.0  ;;  %v1846_v24 = vadd.f32 %v1842_v17, %v671_v32  ;;  %v3229_v30 = vld [vmem:[%s4761_s2 + $0x88] sm:$0xff]  ;;  %v1870_v17 = vpop.permute.xlu1 %1869 }
 0xa17   :  { %v1836_v39 = vmul.f32 %v3821_v22, %v1808_v51  ;;  %v3230_v51 = vld [vmem:[%s4761_s2 + $0x90] sm:$0xff] }
 0xa18   :  { %v1841_v52 = vmul.f32 %v3540_v14, %v1837_v23  ;;  %v1850_v25 = vmax.f32 %v1846_v24, 0.0  ;;  %3678 = vmatprep.subr.mxu1 %v1851_v38  ;;  %v3231_v14 = vld [vmem:[%s4761_s2 + $0x98] sm:$0xff] }
 0xa19   :  { %v1840_v27 = vmul.f32 %v1836_v39, %v641_v43  ;;  %3679 = vmatpush3.msra.mxu1 %v1851_v38  ;;  %v64_v43 = vld [vmem:[%s4760_s1 + $0x160] sm:$0xff] }
 0xa1a   :  { %v1845_v31 = vadd.f32 %v3546_v45, %v1841_v52  ;;  %3680 = vmatprep.subr.mxu1 %v1850_v25  ;;  %3550 = vmatprep.mubr.msk.f32.mxu0 %vm114_vm1, %v64_v43  ;;  %v1880_v45 = vpop.permute.xlu0 %1879  ;;  %v3246_v43 = vld [vmem:[%s4762_s3 + $0xb0] sm:$0xff] }
 0xa1b   :  { %v1844_v48 = vadd.f32 %v1840_v27, %v661_v47  ;;  %3681 = vmatpush3.msra.mxu1 %v1850_v25  ;;  %3551 = vmatmul.mubr.msk.f32.gmra.mxu0 %vm114_vm1, %v65_v34  ;;  %v3245_v34 = vld [vmem:[%s4762_s3 + $0xa8] sm:$0xff] }
 0xa1c   :  { %v1849_v53 = vmax.f32 %v1845_v31, 0.0  ;;  %3553 = vmatprep.mubr.msk.f32.mxu0 %vm114_vm1, %v66_v37  ;;  %v3247_v37 = vld [vmem:[%s4762_s3 + $0xb8] sm:$0xff] }
 0xa1d   :  { %v1848_v19 = vmax.f32 %v1844_v48, 0.0 }
 0xa1e   :  { %3682 = vmatprep.subr.mxu1 %v1849_v53  ;;  %v1865_v50 = vpop.permute.xlu0 %1864 }
 0xa1f   :  { %3683 = vmatpush3.msra.mxu1 %v1849_v53  ;;  %3554 = vmatmul.mubr.msk.f32.gmra.mxu0 %vm114_vm1, %v67_v40  ;;  %v3244_v40 = vld [vmem:[%s4762_s3 + $0xa0] sm:$0xff] }
 0xa20   :  { %3684 = vmatprep.subr.mxu1 %v1848_v19  ;;  %3556 = vmatprep.mubr.msk.f32.mxu0 %vm114_vm1, %v68_v33  ;;  %v3240_v33 = vld [vmem:[%s4761_s2 + $0xa0] sm:$0xff] }
 0xa21   :  { %3685 = vmatpush3.msra.mxu1 %v1848_v19 }
 0xa22   :  { %3687 = vmatmul.mubr.msk.f32.vlgmr.msra.gmra.mxu1 %vm1109_vm2, %v3229_v30 }
 0xa23   :  { %3689 = vmatprep.mubr.msk.f32.mxu1 %vm1109_vm2, %v3230_v51  ;;  %3557 = vmatmul.mubr.msk.f32.gmra.mxu0 %vm114_vm1, %v69_v21 }
 0xa24   :  { %3559 = vmatprep.mubr.msk.f32.mxu0 %vm114_vm1, %v70_v28 }
 0xa26   :  { %3690 = vmatmul.mubr.msk.f32.gmra.mxu1 %vm1109_vm2, %v3231_v14 }
 0xa27   :  { %3560 = vmatmul.mubr.msk.f32.gmra.mxu0 %vm114_vm1, %v71_v29  ;;  %3700 = vmatprep.mubr.msk.f32.mxu1 %vm1109_vm2, %v3240_v33 }
 0xadb   :  { %v3552_v21 = vpop.f32.mrf.mxu0 }
 0xadd   :  { %v681_v28 = vpop.f32.mrf.mxu0 }
 0xae2   :  { %v3688_v36 = vpop.f32.mrf.mxu1 }
 0xae3   :  { %v1966_v35 = vadd.f32 %v3688_v36, %v1870_v17 }
 0xae4   :  { %v1960_v47 = vpop.f32.mrf.mxu1 }
 0xae5   :  { %v1961_v32 = vadd.f32 %v1960_v47, %v1865_v50 }
 0xae6   :  { %v3691_v54 = vpop.f32.mrf.mxu1 }
 0xae7   :  { %v1976_v49 = vadd.f32 %v3691_v54, %v1880_v45  ;;  %v3555_v45 = vpop.f32.mrf.mxu0 }
 0xae8   :  { %v1970_v20 = vpop.f32.mrf.mxu1 }
 0xae9   :  { %v1971_v26 = vadd.f32 %v1970_v20, %v1875_v16  ;;  %1993 = vadd.xlane.f32.xlu1 %v1976_v49  ;;  %v691_v20 = vpop.f32.mrf.mxu0 }
 0xaeb   :  { %1991 = vadd.xlane.f32.xlu0 %v1971_v26 }
 0xaed   :  { %1987 = vadd.xlane.f32.xlu1 %v1961_v32 }
 0xaef   :  { %1989 = vadd.xlane.f32.xlu0 %v1966_v35 }
 0xb72   :  { %v1994_v46 = vpop.xlane.xlu1 %1993 }
 0xb73   :  { %v1998_v22 = vmul.f32 0.0078125, %v1994_v46 }
 0xb74   :  { %v1992_v23 = vpop.xlane.xlu0 %1991 }
 0xb75   :  { %v2002_v38 = vsub.f32 %v1976_v49, %v1998_v22  ;;  %v1997_v24 = vmul.f32 0.0078125, %v1992_v23  ;;  %v3558_v22 = vpop.f32.mrf.mxu0 }
 0xb76   :  { %v1988_v39 = vpop.xlane.xlu1 %1987 }
 0xb77   :  { %v2001_v52 = vsub.f32 %v1971_v26, %v1997_v24  ;;  %v1995_v25 = vmul.f32 0.0078125, %v1988_v39  ;;  %v2006_v27 = vmul.f32 %v2002_v38, %v2002_v38  ;;  %v701_v23 = vpop.f32.mrf.mxu0 }
 0xb78   :  { %v1990_v31 = vpop.xlane.xlu0 %1989 }
 0xb79   :  { %v1999_v48 = vsub.f32 %v1961_v32, %v1995_v25  ;;  %v1996_v53 = vmul.f32 0.0078125, %v1990_v31  ;;  %2013 = vadd.xlane.f32.xlu0 %v2006_v27  ;;  %v2005_v19 = vmul.f32 %v2001_v52, %v2001_v52  ;;  %v3561_v39 = vpop.f32.mrf.mxu0 }
 0xb7b   :  { %v2000_v30 = vsub.f32 %v1966_v35, %v1996_v53  ;;  %2011 = vadd.xlane.f32.xlu1 %v2005_v19  ;;  %v2003_v14 = vmul.f32 %v1999_v48, %v1999_v48  ;;  %v711_v19 = vpop.f32.mrf.mxu0 }
 0xb7d   :  { %v2004_v51 = vmul.f32 %v2000_v30, %v2000_v30 }
 0xb7f   :  { %2009 = vadd.xlane.f32.xlu0 %v2004_v51  ;;  %2007 = vadd.xlane.f32.xlu1 %v2003_v14 }
 0xb90   :  { %2065 = vperm.xlu1 %3781, %v3246_v43  }
 0xb94   :  { %2060 = vperm.xlu1 %3781, %v3245_v34  }
 0xb95   :  { %2070 = vperm.xlu0 %3780, %v3247_v37  }
 0xb99   :  { %2055 = vperm.xlu0 %3780, %v3244_v40  }
 0xc02   :  { %v2014_v29 = vpop.xlane.xlu0 %2013 }
 0xc03   :  { %v2018_v36 = vmul.f32 0.0078125, %v2014_v29 }
 0xc04   :  { %v2012_v47 = vpop.xlane.xlu1 %2011 }
 0xc05   :  { %v2022_v16 = vadd.f32 1e-05, %v2018_v36  ;;  %v2017_v54 = vmul.f32 0.0078125, %v2012_v47 }
 0xc07   :  { %3822 = vrsqrt.f32 %v2022_v16  ;;  %v2021_v49 = vadd.f32 1e-05, %v2017_v54 }
 0xc08   :  { %v2010_v26 = vpop.xlane.xlu0 %2009  ;;  %v2008_v50 = vpop.xlane.xlu1 %2007 }
 0xc09   :  { %3824 = vrsqrt.f32 %v2021_v49  ;;  %v2016_v32 = vmul.f32 0.0078125, %v2010_v26  ;;  %v2015_v17 = vmul.f32 0.0078125, %v2008_v50  ;;  %v73_v49 = vld [vmem:[%s4760_s1 + $0x1a8] sm:$0xff]  ;;  %v75_v26 = vld [vmem:[%s4760_s1 + $0x1b8] sm:$0xff]  ;;  %v76_v50 = vld [vmem:[%s4760_s1 + $0x1c0] sm:$0xff] }
 0xc0b   :  { %v2020_v35 = vadd.f32 1e-05, %v2016_v32  ;;  %v2019_v46 = vadd.f32 1e-05, %v2015_v17  ;;  %v77_v32 = vld [vmem:[%s4760_s1 + $0x1c8] sm:$0xff]  ;;  %v78_v17 = vld [vmem:[%s4760_s1 + $0x1d0] sm:$0xff] }
 0xc0d   :  { %3826 = vrsqrt.f32 %v2020_v35  ;;  %v79_v35 = vld [vmem:[%s4760_s1 + $0x1d8] sm:$0xff] }
 0xc0e   :  { %3828 = vrsqrt.f32 %v2019_v46 }
 0xc10   :  { %v2071_v46 = vpop.permute.xlu0 %2070 }
 0xc14   :  { %v3823_v24 = vpop.eup %3822 }
 0xc15   :  { %v2030_v25 = vmul.f32 %v3823_v24, %v2002_v38 }
 0xc16   :  { %v3825_v27 = vpop.eup %3824 }
 0xc17   :  { %v2034_v31 = vmul.f32 %v3555_v45, %v2030_v25  ;;  %v2029_v53 = vmul.f32 %v3825_v27, %v2001_v52  ;;  %v2056_v27 = vpop.permute.xlu0 %2055 }
 0xc19   :  { %v2033_v51 = vmul.f32 %v2029_v53, %v691_v20  ;;  %v2038_v14 = vadd.f32 %v3561_v39, %v2034_v31  ;;  %v74_v20 = vld [vmem:[%s4760_s1 + $0x1b0] sm:$0xff] }
 0xc1a   :  { %v3827_v43 = vpop.eup %3826 }
 0xc1b   :  { %v3829_v34 = vpop.eup %3828  ;;  %v2028_v37 = vmul.f32 %v3827_v43, %v2000_v30  ;;  %v2042_v40 = vmax.f32 %v2038_v14, 0.0  ;;  %v2037_v33 = vadd.f32 %v2033_v51, %v711_v19  ;;  %v3241_v30 = vld [vmem:[%s4761_s2 + $0xa8] sm:$0xff] }
 0xc1c   :  { %v2027_v29 = vmul.f32 %v3829_v34, %v1999_v48  ;;  %v3242_v48 = vld [vmem:[%s4761_s2 + $0xb0] sm:$0xff] }
 0xc1d   :  { %v2032_v36 = vmul.f32 %v3552_v21, %v2028_v37  ;;  %v2041_v47 = vmax.f32 %v2037_v33, 0.0  ;;  %3692 = vmatprep.subr.mxu1 %v2042_v40  ;;  %v3243_v21 = vld [vmem:[%s4761_s2 + $0xb8] sm:$0xff] }
 0xc1e   :  { %v2031_v16 = vmul.f32 %v2027_v29, %v681_v28  ;;  %3693 = vmatpush3.msra.mxu1 %v2042_v40  ;;  %v72_v28 = vld [vmem:[%s4760_s1 + $0x1a0] sm:$0xff] }
 0xc1f   :  { %v2036_v54 = vadd.f32 %v3558_v22, %v2032_v36  ;;  %3694 = vmatprep.subr.mxu1 %v2041_v47  ;;  %3562 = vmatprep.mubr.msk.f32.mxu0 %vm114_vm1, %v72_v28  ;;  %v3258_v28 = vld [vmem:[%s4762_s3 + $0xd0] sm:$0xff] }
 0xc20   :  { %v2035_v38 = vadd.f32 %v2031_v16, %v701_v23  ;;  %3695 = vmatpush3.msra.mxu1 %v2041_v47  ;;  %3563 = vmatmul.mubr.msk.f32.gmra.mxu0 %vm114_vm1, %v73_v49  ;;  %v2066_v23 = vpop.permute.xlu1 %2065  ;;  %v3257_v49 = vld [vmem:[%s4762_s3 + $0xc8] sm:$0xff] }
 0xc21   :  { %v2040_v45 = vmax.f32 %v2036_v54, 0.0  ;;  %3565 = vmatprep.mubr.msk.f32.mxu0 %vm114_vm1, %v74_v20  ;;  %v3259_v20 = vld [vmem:[%s4762_s3 + $0xd8] sm:$0xff] }
 0xc22   :  { %v2039_v52 = vmax.f32 %v2035_v38, 0.0 }
 0xc23   :  { %3696 = vmatprep.subr.mxu1 %v2040_v45 }
 0xc24   :  { %3697 = vmatpush3.msra.mxu1 %v2040_v45  ;;  %3566 = vmatmul.mubr.msk.f32.gmra.mxu0 %vm114_vm1, %v75_v26  ;;  %v2061_v14 = vpop.permute.xlu1 %2060  ;;  %v3256_v26 = vld [vmem:[%s4762_s3 + $0xc0] sm:$0xff] }
 0xc25   :  { %3698 = vmatprep.subr.mxu1 %v2039_v52  ;;  %3568 = vmatprep.mubr.msk.f32.mxu0 %vm114_vm1, %v76_v50  ;;  %v3252_v50 = vld [vmem:[%s4761_s2 + $0xc0] sm:$0xff] }
 0xc26   :  { %3699 = vmatpush3.msra.mxu1 %v2039_v52 }
 0xc27   :  { %3701 = vmatmul.mubr.msk.f32.vlgmr.msra.gmra.mxu1 %vm1109_vm2, %v3241_v30 }
 0xc28   :  { %3703 = vmatprep.mubr.msk.f32.mxu1 %vm1109_vm2, %v3242_v48  ;;  %3569 = vmatmul.mubr.msk.f32.gmra.mxu0 %vm114_vm1, %v77_v32 }
 0xc29   :  { %3571 = vmatprep.mubr.msk.f32.mxu0 %vm114_vm1, %v78_v17 }
 0xc2b   :  { %3704 = vmatmul.mubr.msk.f32.gmra.mxu1 %vm1109_vm2, %v3243_v21 }
 0xc2c   :  { %3572 = vmatmul.mubr.msk.f32.gmra.mxu0 %vm114_vm1, %v79_v35  ;;  %3714 = vmatprep.mubr.msk.f32.mxu1 %vm1109_vm2, %v3252_v50 }
 0xce0   :  { %v3564_v32 = vpop.f32.mrf.mxu0 }
 0xce2   :  { %v721_v17 = vpop.f32.mrf.mxu0 }
 0xce7   :  { %v3702_v22 = vpop.f32.mrf.mxu1 }
 0xce8   :  { %v2157_v43 = vadd.f32 %v3702_v22, %v2061_v14  ;;  %v3567_v22 = vpop.f32.mrf.mxu0 }
 0xce9   :  { %v2151_v24 = vpop.f32.mrf.mxu1 }
 0xcea   :  { %v2152_v53 = vadd.f32 %v2151_v24, %v2056_v27  ;;  %v4549_v40 = vadd.f32 %v2157_v43, %v4409_v44  ;;  %v731_v27 = vpop.f32.mrf.mxu0 }
 0xceb   :  { %v3705_v39 = vpop.f32.mrf.mxu1 }
 0xcec   :  { %v2167_v25 = vadd.f32 %v3705_v39, %v2071_v46  ;;  %v4545_v37 = vadd.f32 %v2152_v53, %v4405_v42 }
 0xced   :  { %v2161_v31 = vpop.f32.mrf.mxu1 }
 0xcee   :  { %v4538_v19 = vadd.f32 %v2167_v25, %v4398_v15  ;;  %v2162_v51 = vadd.f32 %v2161_v31, %v2066_v23 }
 0xcf0   :  { %v4541_v34 = vadd.f32 %v2162_v51, %v4401_v41  ;;  %2188 = vadd.xlane.f32.xlu1 %v4538_v19 }
 0xcf2   :  { %2186 = vadd.xlane.f32.xlu0 %v4541_v34 }
 0xcf4   :  { %2182 = vadd.xlane.f32.xlu1 %v4545_v37 }
 0xcf6   :  { %2184 = vadd.xlane.f32.xlu0 %v4549_v40 }
 0xd79   :  { %v2189_v15 = vpop.xlane.xlu1 %2188 }
 0xd7a   :  { %v2193_v33 = vmul.f32 0.0078125, %v2189_v15 }
 0xd7b   :  { %v2187_v29 = vpop.xlane.xlu0 %2186 }
 0xd7c   :  { %v2197_v41 = vsub.f32 %v4538_v19, %v2193_v33  ;;  %v2192_v36 = vmul.f32 0.0078125, %v2187_v29  ;;  %v3570_v33 = vpop.f32.mrf.mxu0 }
 0xd7d   :  { %v2183_v47 = vpop.xlane.xlu1 %2182 }
 0xd7e   :  { %v2196_v16 = vsub.f32 %v4541_v34, %v2192_v36  ;;  %v2190_v42 = vmul.f32 0.0078125, %v2183_v47  ;;  %v2201_v54 = vmul.f32 %v2197_v41, %v2197_v41  ;;  %v741_v29 = vpop.f32.mrf.mxu0 }
 0xd7f   :  { %v2185_v38 = vpop.xlane.xlu0 %2184 }
 0xd80   :  { %v2194_v45 = vsub.f32 %v4545_v37, %v2190_v42  ;;  %v2191_v44 = vmul.f32 0.0078125, %v2185_v38  ;;  %2208 = vadd.xlane.f32.xlu0 %v2201_v54  ;;  %v2200_v52 = vmul.f32 %v2196_v16, %v2196_v16  ;;  %v3573_v47 = vpop.f32.mrf.mxu0 }
 0xd82   :  { %v2195_v30 = vsub.f32 %v4549_v40, %v2191_v44  ;;  %2206 = vadd.xlane.f32.xlu1 %v2200_v52  ;;  %v2198_v21 = vmul.f32 %v2194_v45, %v2194_v45  ;;  %v751_v52 = vpop.f32.mrf.mxu0 }
 0xd84   :  { %v2199_v48 = vmul.f32 %v2195_v30, %v2195_v30 }
 0xd86   :  { %2204 = vadd.xlane.f32.xlu0 %v2199_v48  ;;  %2202 = vadd.xlane.f32.xlu1 %v2198_v21 }
 0xd97   :  { %2260 = vperm.xlu1 %3781, %v3258_v28  }
 0xd9b   :  { %2255 = vperm.xlu1 %3781, %v3257_v49  }
 0xd9c   :  { %2265 = vperm.xlu0 %3780, %v3259_v20  }
 0xda0   :  { %2250 = vperm.xlu0 %3780, %v3256_v26  }
 0xe09   :  { %v2209_v35 = vpop.xlane.xlu0 %2208 }
 0xe0a   :  { %v2213_v46 = vmul.f32 0.0078125, %v2209_v35 }
 0xe0b   :  { %v2207_v23 = vpop.xlane.xlu1 %2206 }
 0xe0c   :  { %v2217_v24 = vadd.f32 1e-05, %v2213_v46  ;;  %v2212_v39 = vmul.f32 0.0078125, %v2207_v23 }
 0xe0e   :  { %3830 = vrsqrt.f32 %v2217_v24  ;;  %v2216_v25 = vadd.f32 1e-05, %v2212_v39 }
 0xe0f   :  { %v2205_v31 = vpop.xlane.xlu0 %2204  ;;  %v2203_v53 = vpop.xlane.xlu1 %2202 }
 0xe10   :  { %3832 = vrsqrt.f32 %v2216_v25  ;;  %v2211_v51 = vmul.f32 0.0078125, %v2205_v31  ;;  %v2210_v14 = vmul.f32 0.0078125, %v2203_v53  ;;  %v81_v25 = vld [vmem:[%s4760_s1 + $0x1e8] sm:$0xff]  ;;  %v83_v31 = vld [vmem:[%s4760_s1 + $0x1f8] sm:$0xff]  ;;  %v84_v53 = vld [vmem:[%s4760_s1 + $0x200] sm:$0xff] }
 0xe12   :  { %v2215_v43 = vadd.f32 1e-05, %v2211_v51  ;;  %v2214_v15 = vadd.f32 1e-05, %v2210_v14  ;;  %v85_v51 = vld [vmem:[%s4760_s1 + $0x208] sm:$0xff]  ;;  %v86_v14 = vld [vmem:[%s4760_s1 + $0x210] sm:$0xff] }
 0xe14   :  { %3834 = vrsqrt.f32 %v2215_v43  ;;  %v87_v43 = vld [vmem:[%s4760_s1 + $0x218] sm:$0xff] }
 0xe15   :  { %3836 = vrsqrt.f32 %v2214_v15 }
 0xe1b   :  { %v3831_v36 = vpop.eup %3830 }
 0xe1c   :  { %v2225_v42 = vmul.f32 %v3831_v36, %v2197_v41  ;;  %v2261_v36 = vpop.permute.xlu1 %2260 }
 0xe1d   :  { %v3833_v54 = vpop.eup %3832 }
 0xe1e   :  { %v2229_v38 = vmul.f32 %v3567_v22, %v2225_v42  ;;  %v2224_v44 = vmul.f32 %v3833_v54, %v2196_v16 }
 0xe20   :  { %v2228_v48 = vmul.f32 %v2224_v44, %v731_v27  ;;  %v2233_v21 = vadd.f32 %v3573_v47, %v2229_v38  ;;  %v82_v27 = vld [vmem:[%s4760_s1 + $0x1f0] sm:$0xff] }
 0xe21   :  { %v3835_v28 = vpop.eup %3834 }
 0xe22   :  { %v3837_v49 = vpop.eup %3836  ;;  %v2223_v20 = vmul.f32 %v3835_v28, %v2195_v30  ;;  %v2237_v26 = vmax.f32 %v2233_v21, 0.0  ;;  %v2232_v50 = vadd.f32 %v2228_v48, %v751_v52  ;;  %v3253_v30 = vld [vmem:[%s4761_s2 + $0xc8] sm:$0xff]  ;;  %v2256_v48 = vpop.permute.xlu1 %2255 }
 0xe23   :  { %v2222_v35 = vmul.f32 %v3837_v49, %v2194_v45  ;;  %v3254_v45 = vld [vmem:[%s4761_s2 + $0xd0] sm:$0xff] }
 0xe24   :  { %v2227_v46 = vmul.f32 %v3564_v32, %v2223_v20  ;;  %v2236_v23 = vmax.f32 %v2232_v50, 0.0  ;;  %3706 = vmatprep.subr.mxu1 %v2237_v26  ;;  %v3255_v32 = vld [vmem:[%s4761_s2 + $0xd8] sm:$0xff] }
 0xe25   :  { %v2226_v24 = vmul.f32 %v2222_v35, %v721_v17  ;;  %3707 = vmatpush3.msra.mxu1 %v2237_v26  ;;  %v80_v17 = vld [vmem:[%s4760_s1 + $0x1e0] sm:$0xff] }
 0xe26   :  { %v2231_v39 = vadd.f32 %v3570_v33, %v2227_v46  ;;  %3708 = vmatprep.subr.mxu1 %v2236_v23  ;;  %3574 = vmatprep.mubr.msk.f32.mxu0 %vm114_vm1, %v80_v17  ;;  %v2266_v33 = vpop.permute.xlu0 %2265  ;;  %v3270_v17 = vld [vmem:[%s4762_s3 + $0xf0] sm:$0xff] }
 0xe27   :  { %v2230_v41 = vadd.f32 %v2226_v24, %v741_v29  ;;  %3709 = vmatpush3.msra.mxu1 %v2236_v23  ;;  %3575 = vmatmul.mubr.msk.f32.gmra.mxu0 %vm114_vm1, %v81_v25  ;;  %v3269_v25 = vld [vmem:[%s4762_s3 + $0xe8] sm:$0xff] }
 0xe28   :  { %v2235_v22 = vmax.f32 %v2231_v39, 0.0  ;;  %3577 = vmatprep.mubr.msk.f32.mxu0 %vm114_vm1, %v82_v27  ;;  %v3271_v27 = vld [vmem:[%s4762_s3 + $0xf8] sm:$0xff] }
 0xe29   :  { %v2234_v16 = vmax.f32 %v2230_v41, 0.0 }
 0xe2a   :  { %3710 = vmatprep.subr.mxu1 %v2235_v22  ;;  %v2251_v44 = vpop.permute.xlu0 %2250 }
 0xe2b   :  { %3711 = vmatpush3.msra.mxu1 %v2235_v22  ;;  %3578 = vmatmul.mubr.msk.f32.gmra.mxu0 %vm114_vm1, %v83_v31  ;;  %v3268_v31 = vld [vmem:[%s4762_s3 + $0xe0] sm:$0xff] }
 0xe2c   :  { %3712 = vmatprep.subr.mxu1 %v2234_v16  ;;  %3580 = vmatprep.mubr.msk.f32.mxu0 %vm114_vm1, %v84_v53  ;;  %v3264_v53 = vld [vmem:[%s4761_s2 + $0xe0] sm:$0xff] }
 0xe2d   :  { %3713 = vmatpush3.msra.mxu1 %v2234_v16 }
 0xe2e   :  { %3715 = vmatmul.mubr.msk.f32.vlgmr.msra.gmra.mxu1 %vm1109_vm2, %v3253_v30 }
 0xe2f   :  { %3717 = vmatprep.mubr.msk.f32.mxu1 %vm1109_vm2, %v3254_v45  ;;  %3581 = vmatmul.mubr.msk.f32.gmra.mxu0 %vm114_vm1, %v85_v51 }
 0xe30   :  { %3583 = vmatprep.mubr.msk.f32.mxu0 %vm114_vm1, %v86_v14 }
 0xe32   :  { %3718 = vmatmul.mubr.msk.f32.gmra.mxu1 %vm1109_vm2, %v3255_v32 }
 0xe33   :  { %3584 = vmatmul.mubr.msk.f32.gmra.mxu0 %vm114_vm1, %v87_v43  ;;  %3728 = vmatprep.mubr.msk.f32.mxu1 %vm1109_vm2, %v3264_v53 }
 0xee7   :  { %v3576_v51 = vpop.f32.mrf.mxu0 }
 0xee9   :  { %v761_v14 = vpop.f32.mrf.mxu0 }
 0xeee   :  { %v3716_v15 = vpop.f32.mrf.mxu1 }
 0xeef   :  { %v2352_v21 = vadd.f32 %v3716_v15, %v2256_v48 }
 0xef0   :  { %v2346_v29 = vpop.f32.mrf.mxu1 }
 0xef1   :  { %v2347_v52 = vadd.f32 %v2346_v29, %v2251_v44 }
 0xef2   :  { %v3719_v47 = vpop.f32.mrf.mxu1 }
 0xef3   :  { %v2362_v42 = vadd.f32 %v3719_v47, %v2266_v33  ;;  %v3579_v33 = vpop.f32.mrf.mxu0 }
 0xef4   :  { %v2356_v54 = vpop.f32.mrf.mxu1 }
 0xef5   :  { %v2357_v38 = vadd.f32 %v2356_v54, %v2261_v36  ;;  %2379 = vadd.xlane.f32.xlu1 %v2362_v42  ;;  %v771_v54 = vpop.f32.mrf.mxu0 }
 0xef7   :  { %2377 = vadd.xlane.f32.xlu0 %v2357_v38 }
 0xef9   :  { %2373 = vadd.xlane.f32.xlu1 %v2347_v52 }
 0xefb   :  { %2375 = vadd.xlane.f32.xlu0 %v2352_v21 }
 0xf7e   :  { %v2380_v28 = vpop.xlane.xlu1 %2379 }
 0xf7f   :  { %v2384_v49 = vmul.f32 0.0078125, %v2380_v28 }
 0xf80   :  { %v2378_v20 = vpop.xlane.xlu0 %2377 }
 0xf81   :  { %v2388_v26 = vsub.f32 %v2362_v42, %v2384_v49  ;;  %v2383_v50 = vmul.f32 0.0078125, %v2378_v20  ;;  %v3582_v49 = vpop.f32.mrf.mxu0 }
 0xf82   :  { %v2374_v35 = vpop.xlane.xlu1 %2373 }
 0xf83   :  { %v2387_v46 = vsub.f32 %v2357_v38, %v2383_v50  ;;  %v2381_v23 = vmul.f32 0.0078125, %v2374_v35  ;;  %v2392_v24 = vmul.f32 %v2388_v26, %v2388_v26  ;;  %v781_v20 = vpop.f32.mrf.mxu0 }
 0xf84   :  { %v2376_v39 = vpop.xlane.xlu0 %2375 }
 0xf85   :  { %v2385_v41 = vsub.f32 %v2347_v52, %v2381_v23  ;;  %v2382_v22 = vmul.f32 0.0078125, %v2376_v39  ;;  %2399 = vadd.xlane.f32.xlu0 %v2392_v24  ;;  %v2391_v16 = vmul.f32 %v2387_v46, %v2387_v46  ;;  %v3585_v35 = vpop.f32.mrf.mxu0 }
 0xf87   :  { %v2386_v30 = vsub.f32 %v2352_v21, %v2382_v22  ;;  %2397 = vadd.xlane.f32.xlu1 %v2391_v16  ;;  %v2389_v32 = vmul.f32 %v2385_v41, %v2385_v41  ;;  %v791_v16 = vpop.f32.mrf.mxu0 }
 0xf89   :  { %v2390_v45 = vmul.f32 %v2386_v30, %v2386_v30 }
 0xf8b   :  { %2395 = vadd.xlane.f32.xlu0 %v2390_v45  ;;  %2393 = vadd.xlane.f32.xlu1 %v2389_v32 }
 0xf9c   :  { %2451 = vperm.xlu1 %3781, %v3270_v17  }
 0xfa0   :  { %2446 = vperm.xlu1 %3781, %v3269_v25  }
 0xfa1   :  { %2456 = vperm.xlu0 %3780, %v3271_v27  }
 0xfa5   :  { %2441 = vperm.xlu0 %3780, %v3268_v31  }
0x100e   :  { %v2400_v43 = vpop.xlane.xlu0 %2399 }
0x100f   :  { %v2404_v15 = vmul.f32 0.0078125, %v2400_v43 }
0x1010   :  { %v2398_v29 = vpop.xlane.xlu1 %2397 }
0x1011   :  { %v2408_v36 = vadd.f32 1e-05, %v2404_v15  ;;  %v2403_v47 = vmul.f32 0.0078125, %v2398_v29 }
0x1013   :  { %3838 = vrsqrt.f32 %v2408_v36  ;;  %v2407_v42 = vadd.f32 1e-05, %v2403_v47 }
0x1014   :  { %v2396_v38 = vpop.xlane.xlu0 %2395  ;;  %v2394_v44 = vpop.xlane.xlu1 %2393 }
0x1015   :  { %3840 = vrsqrt.f32 %v2407_v42  ;;  %v2402_v52 = vmul.f32 0.0078125, %v2396_v38  ;;  %v2401_v48 = vmul.f32 0.0078125, %v2394_v44 }
0x1017   :  { %v2406_v21 = vadd.f32 1e-05, %v2402_v52  ;;  %v2405_v28 = vadd.f32 1e-05, %v2401_v48 }
0x1019   :  { %3842 = vrsqrt.f32 %v2406_v21 }
0x101a   :  { %3844 = vrsqrt.f32 %v2405_v28 }
0x1020   :  { %v3839_v50 = vpop.eup %3838 }
0x1021   :  { %v2416_v23 = vmul.f32 %v3839_v50, %v2388_v26 }
0x1022   :  { %v3841_v24 = vpop.eup %3840 }
0x1023   :  { %v2420_v39 = vmul.f32 %v3579_v33, %v2416_v23  ;;  %v2415_v22 = vmul.f32 %v3841_v24, %v2387_v46 }
0x1025   :  { %v2419_v45 = vmul.f32 %v2415_v22, %v771_v54  ;;  %v2424_v32 = vadd.f32 %v3585_v35, %v2420_v39  ;;  %v2452_v54 = vpop.permute.xlu1 %2451 }
0x1026   :  { %v3843_v17 = vpop.eup %3842 }
0x1027   :  { %v3845_v25 = vpop.eup %3844  ;;  %v2414_v27 = vmul.f32 %v3843_v17, %v2386_v30  ;;  %v2428_v31 = vmax.f32 %v2424_v32, 0.0  ;;  %v2423_v53 = vadd.f32 %v2419_v45, %v791_v16  ;;  %v3265_v30 = vld [vmem:[%s4761_s2 + $0xe8] sm:$0xff] }
0x1028   :  { %v2413_v43 = vmul.f32 %v3845_v25, %v2385_v41  ;;  %v3266_v41 = vld [vmem:[%s4761_s2 + $0xf0] sm:$0xff] }
0x1029   :  { %v2418_v15 = vmul.f32 %v3576_v51, %v2414_v27  ;;  %v2427_v29 = vmax.f32 %v2423_v53, 0.0  ;;  %3720 = vmatprep.subr.mxu1 %v2428_v31  ;;  %v3267_v51 = vld [vmem:[%s4761_s2 + $0xf8] sm:$0xff]  ;;  %v2447_v50 = vpop.permute.xlu1 %2446 }
0x102a   :  { %v2417_v36 = vmul.f32 %v2413_v43, %v761_v14  ;;  %3721 = vmatpush3.msra.mxu1 %v2428_v31  ;;  %v2457_v14 = vpop.permute.xlu0 %2456 }
0x102b   :  { %v2422_v47 = vadd.f32 %v3582_v49, %v2418_v15  ;;  %3722 = vmatprep.subr.mxu1 %v2427_v29 }
0x102c   :  { %v2421_v26 = vadd.f32 %v2417_v36, %v781_v20  ;;  %3723 = vmatpush3.msra.mxu1 %v2427_v29  ;;  %v3282_v36 = vld [vmem:[%s4762_s3 + $0x110] sm:$0xff] }
0x102d   :  { %v2426_v33 = vmax.f32 %v2422_v47, 0.0  ;;  %v3281_v47 = vld [vmem:[%s4762_s3 + $0x108] sm:$0xff] }
0x102e   :  { %v2425_v46 = vmax.f32 %v2421_v26, 0.0  ;;  %v2442_v48 = vpop.permute.xlu0 %2441  ;;  %v3283_v26 = vld [vmem:[%s4762_s3 + $0x118] sm:$0xff] }
0x102f   :  { %3724 = vmatprep.subr.mxu1 %v2426_v33 }
0x1030   :  { %3725 = vmatpush3.msra.mxu1 %v2426_v33  ;;  %v3280_v33 = vld [vmem:[%s4762_s3 + $0x100] sm:$0xff] }
0x1031   :  { %3726 = vmatprep.subr.mxu1 %v2425_v46 }
0x1032   :  { %3727 = vmatpush3.msra.mxu1 %v2425_v46  ;;  %v3276_v46 = vld [vmem:[%s4761_s2 + $0x100] sm:$0xff] }
0x1033   :  { %3729 = vmatmul.mubr.msk.f32.vlgmr.msra.gmra.mxu1 %vm1109_vm2, %v3265_v30 }
0x1034   :  { %3731 = vmatprep.mubr.msk.f32.mxu1 %vm1109_vm2, %v3266_v41 }
0x1037   :  { %3732 = vmatmul.mubr.msk.f32.gmra.mxu1 %vm1109_vm2, %v3267_v51 }
0x1038   :  { %3742 = vmatprep.mubr.msk.f32.mxu1 %vm1109_vm2, %v3276_v46 }
0x10f3   :  { %v3730_v42 = vpop.f32.mrf.mxu1 }
0x10f4   :  { %v2543_v35 = vadd.f32 %v3730_v42, %v2447_v50 }
0x10f5   :  { %v2537_v38 = vpop.f32.mrf.mxu1 }
0x10f6   :  { %v2538_v28 = vadd.f32 %v2537_v38, %v2442_v48  ;;  %v4657_v39 = vadd.f32 %v2543_v35, %v4549_v40 }
0x10f7   :  { %v3733_v44 = vpop.f32.mrf.mxu1 }
0x10f8   :  { %v2553_v52 = vadd.f32 %v3733_v44, %v2457_v14  ;;  %v4653_v24 = vadd.f32 %v2538_v28, %v4545_v37 }
0x10f9   :  { %v2547_v21 = vpop.f32.mrf.mxu1 }
0x10fa   :  { %v4646_v49 = vadd.f32 %v2553_v52, %v4538_v19  ;;  %v2548_v20 = vadd.f32 %v2547_v21, %v2452_v54 }
0x10fc   :  { %v4649_v23 = vadd.f32 %v2548_v20, %v4541_v34  ;;  %2574 = vadd.xlane.f32.xlu1 %v4646_v49 }
0x10fe   :  { %2572 = vadd.xlane.f32.xlu0 %v4649_v23 }
0x1100   :  { %2568 = vadd.xlane.f32.xlu1 %v4653_v24 }
0x1102   :  { %2570 = vadd.xlane.f32.xlu0 %v4657_v39 }
0x1185   :  { %v2575_v19 = vpop.xlane.xlu1 %2574 }
0x1186   :  { %v2579_v22 = vmul.f32 0.0078125, %v2575_v19 }
0x1187   :  { %v2573_v16 = vpop.xlane.xlu0 %2572 }
0x1188   :  { %v2583_v34 = vsub.f32 %v4646_v49, %v2579_v22  ;;  %v2578_v45 = vmul.f32 0.0078125, %v2573_v16 }
0x1189   :  { %v2569_v32 = vpop.xlane.xlu1 %2568 }
0x118a   :  { %v2582_v17 = vsub.f32 %v4649_v23, %v2578_v45  ;;  %v2576_v37 = vmul.f32 0.0078125, %v2569_v32  ;;  %v2587_v25 = vmul.f32 %v2583_v34, %v2583_v34 }
0x118b   :  { %v2571_v27 = vpop.xlane.xlu0 %2570 }
0x118c   :  { %v2580_v31 = vsub.f32 %v4653_v24, %v2576_v37  ;;  %v2577_v40 = vmul.f32 0.0078125, %v2571_v27  ;;  %2594 = vadd.xlane.f32.xlu0 %v2587_v25  ;;  %v2586_v53 = vmul.f32 %v2582_v17, %v2582_v17 }
0x118e   :  { %v2581_v43 = vsub.f32 %v4657_v39, %v2577_v40  ;;  %2592 = vadd.xlane.f32.xlu1 %v2586_v53  ;;  %v2584_v29 = vmul.f32 %v2580_v31, %v2580_v31 }
0x1190   :  { %v2585_v15 = vmul.f32 %v2581_v43, %v2581_v43 }
0x1192   :  { %2590 = vadd.xlane.f32.xlu0 %v2585_v15  ;;  %2588 = vadd.xlane.f32.xlu1 %v2584_v29 }
0x11a3   :  { %2646 = vperm.xlu1 %3781, %v3282_v36  }
0x11a7   :  { %2641 = vperm.xlu1 %3781, %v3281_v47  }
0x11a8   :  { %2651 = vperm.xlu0 %3780, %v3283_v26  }
0x11ac   :  { %2636 = vperm.xlu0 %3780, %v3280_v33  }
0x1215   :  { %v2595_v30 = vpop.xlane.xlu0 %2594 }
0x1216   :  { %v2599_v41 = vmul.f32 0.0078125, %v2595_v30 }
0x1217   :  { %v2593_v51 = vpop.xlane.xlu1 %2592 }
0x1218   :  { %v2603_v14 = vadd.f32 1e-05, %v2599_v41  ;;  %v2598_v42 = vmul.f32 0.0078125, %v2593_v51 }
0x121a   :  { %3846 = vrsqrt.f32 %v2603_v14  ;;  %v2602_v54 = vadd.f32 1e-05, %v2598_v42 }
0x121b   :  { %v2591_v38 = vpop.xlane.xlu0 %2590  ;;  %v2589_v44 = vpop.xlane.xlu1 %2588 }
0x121c   :  { %3848 = vrsqrt.f32 %v2602_v54  ;;  %v2597_v52 = vmul.f32 0.0078125, %v2591_v38  ;;  %v2596_v48 = vmul.f32 0.0078125, %v2589_v44 }
0x121e   :  { %v2601_v21 = vadd.f32 1e-05, %v2597_v52  ;;  %v2600_v28 = vadd.f32 1e-05, %v2596_v48 }
0x1220   :  { %3850 = vrsqrt.f32 %v2601_v21 }
0x1221   :  { %3852 = vrsqrt.f32 %v2600_v28 }
0x1227   :  { %v3847_v20 = vpop.eup %3846 }
0x1228   :  { %v2611_v50 = vmul.f32 %v3847_v20, %v2583_v34 }
0x1229   :  { %v3849_v35 = vpop.eup %3848 }
0x122a   :  { %v2615_v19 = vmul.f32 %v4153_v57, %v2611_v50  ;;  %v2610_v22 = vmul.f32 %v3849_v35, %v2582_v17 }
0x122c   :  { %v2619_v16 = vadd.f32 %v4161_v61, %v2615_v19  ;;  %v2614_v45 = vmul.f32 %v2610_v22, %v4155_v58 }
0x122d   :  { %v3851_v32 = vpop.eup %3850 }
0x122e   :  { %v3853_v37 = vpop.eup %3852  ;;  %v2623_v25 = vmax.f32 %v2619_v16, 0.0  ;;  %v2618_v27 = vadd.f32 %v2614_v45, %v4163_v62  ;;  %v2609_v40 = vmul.f32 %v3851_v32, %v2581_v43  ;;  %v3277_v62 = vld [vmem:[%s4761_s2 + $0x108] sm:$0xff]  ;;  %v2647_v43 = vpop.permute.xlu1 %2646  ;;  %v3294_v32 = vld [vmem:[%s4762_s3 + $0x130] sm:$0xff] }
0x122f   :  { %v2608_v53 = vmul.f32 %v3853_v37, %v2580_v31  ;;  %v3293_v37 = vld [vmem:[%s4762_s3 + $0x128] sm:$0xff] }
0x1230   :  { %3734 = vmatprep.subr.mxu1 %v2623_v25  ;;  %v2622_v15 = vmax.f32 %v2618_v27, 0.0  ;;  %v2613_v29 = vmul.f32 %v4149_v55, %v2609_v40  ;;  %v3278_v55 = vld [vmem:[%s4761_s2 + $0x110] sm:$0xff]  ;;  %v3292_v27 = vld [vmem:[%s4762_s3 + $0x120] sm:$0xff] }
0x1231   :  { %3735 = vmatpush3.msra.mxu1 %v2623_v25  ;;  %v2612_v34 = vmul.f32 %v2608_v53, %v4151_v56  ;;  %v3279_v56 = vld [vmem:[%s4761_s2 + $0x118] sm:$0xff]  ;;  %v3288_v40 = vld [vmem:[%s4761_s2 + $0x120] sm:$0xff] }
0x1232   :  { %3736 = vmatprep.subr.mxu1 %v2622_v15  ;;  %v2617_v57 = vadd.f32 %v4157_v59, %v2613_v29  ;;  %v2642_v41 = vpop.permute.xlu1 %2641  ;;  %v3295_v25 = vld [vmem:[%s4762_s3 + $0x138] sm:$0xff] }
0x1233   :  { %3737 = vmatpush3.msra.mxu1 %v2622_v15  ;;  %v2616_v58 = vadd.f32 %v2612_v34, %v4159_v60  ;;  %v2652_v60 = vpop.permute.xlu0 %2651 }
0x1234   :  { %v2621_v61 = vmax.f32 %v2617_v57, 0.0 }
0x1235   :  { %v2620_v17 = vmax.f32 %v2616_v58, 0.0 }
0x1236   :  { %3738 = vmatprep.subr.mxu1 %v2621_v61 }
0x1237   :  { %3739 = vmatpush3.msra.mxu1 %v2621_v61  ;;  %v2637_v46 = vpop.permute.xlu0 %2636 }
0x1238   :  { %3740 = vmatprep.subr.mxu1 %v2620_v17 }
0x1239   :  { %3741 = vmatpush3.msra.mxu1 %v2620_v17 }
0x123a   :  { %3743 = vmatmul.mubr.msk.f32.vlgmr.msra.gmra.mxu1 %vm1109_vm2, %v3277_v62 }
0x123b   :  { %3745 = vmatprep.mubr.msk.f32.mxu1 %vm1109_vm2, %v3278_v55 }
0x123e   :  { %3746 = vmatmul.mubr.msk.f32.gmra.mxu1 %vm1109_vm2, %v3279_v56 }
0x123f   :  { %3756 = vmatprep.mubr.msk.f32.mxu1 %vm1109_vm2, %v3288_v40 }
0x12fa   :  { %v3744_v59 = vpop.f32.mrf.mxu1 }
0x12fb   :  { %v2738_v51 = vadd.f32 %v3744_v59, %v2642_v41 }
0x12fc   :  { %v2732_v31 = vpop.f32.mrf.mxu1 }
0x12fd   :  { %v2733_v30 = vadd.f32 %v2732_v31, %v2637_v46 }
0x12fe   :  { %v3747_v36 = vpop.f32.mrf.mxu1 }
0x12ff   :  { %v2748_v47 = vadd.f32 %v3747_v36, %v2652_v60 }
0x1300   :  { %v2742_v26 = vpop.f32.mrf.mxu1 }
0x1301   :  { %v2743_v33 = vadd.f32 %v2742_v26, %v2647_v43  ;;  %2765 = vadd.xlane.f32.xlu1 %v2748_v47 }
0x1303   :  { %2763 = vadd.xlane.f32.xlu0 %v2743_v33 }
0x1305   :  { %2759 = vadd.xlane.f32.xlu1 %v2733_v30 }
0x1307   :  { %2761 = vadd.xlane.f32.xlu0 %v2738_v51 }
0x138a   :  { %v2766_v14 = vpop.xlane.xlu1 %2765 }
0x138b   :  { %v2770_v42 = vmul.f32 0.0078125, %v2766_v14 }
0x138c   :  { %v2764_v54 = vpop.xlane.xlu0 %2763 }
0x138d   :  { %v2774_v38 = vsub.f32 %v2748_v47, %v2770_v42  ;;  %v2769_v44 = vmul.f32 0.0078125, %v2764_v54 }
0x138e   :  { %v2760_v52 = vpop.xlane.xlu1 %2759 }
0x138f   :  { %v2773_v48 = vsub.f32 %v2743_v33, %v2769_v44  ;;  %v2767_v21 = vmul.f32 0.0078125, %v2760_v52  ;;  %v2778_v28 = vmul.f32 %v2774_v38, %v2774_v38 }
0x1390   :  { %v2762_v20 = vpop.xlane.xlu0 %2761 }
0x1391   :  { %v2771_v50 = vsub.f32 %v2733_v30, %v2767_v21  ;;  %v2768_v35 = vmul.f32 0.0078125, %v2762_v20  ;;  %2785 = vadd.xlane.f32.xlu0 %v2778_v28  ;;  %v2777_v19 = vmul.f32 %v2773_v48, %v2773_v48 }
0x1393   :  { %v2772_v22 = vsub.f32 %v2738_v51, %v2768_v35  ;;  %2783 = vadd.xlane.f32.xlu1 %v2777_v19  ;;  %v2775_v45 = vmul.f32 %v2771_v50, %v2771_v50 }
0x1395   :  { %v2776_v16 = vmul.f32 %v2772_v22, %v2772_v22 }
0x1397   :  { %2781 = vadd.xlane.f32.xlu0 %v2776_v16  ;;  %2779 = vadd.xlane.f32.xlu1 %v2775_v45 }
0x13a8   :  { %2837 = vperm.xlu1 %3781, %v3294_v32  }
0x13ac   :  { %2832 = vperm.xlu1 %3781, %v3293_v37  }
0x13ad   :  { %2842 = vperm.xlu0 %3780, %v3295_v25  }
0x13b1   :  { %2827 = vperm.xlu0 %3780, %v3292_v27  }
0x141a   :  { %v2786_v53 = vpop.xlane.xlu0 %2785 }
0x141b   :  { %v2790_v15 = vmul.f32 0.0078125, %v2786_v53 }
0x141c   :  { %v2784_v29 = vpop.xlane.xlu1 %2783 }
0x141d   :  { %v2794_v34 = vadd.f32 1e-05, %v2790_v15  ;;  %v2789_v57 = vmul.f32 0.0078125, %v2784_v29 }
0x141f   :  { %3854 = vrsqrt.f32 %v2794_v34  ;;  %v2793_v58 = vadd.f32 1e-05, %v2789_v57 }
0x1420   :  { %v2782_v61 = vpop.xlane.xlu0 %2781  ;;  %v2780_v17 = vpop.xlane.xlu1 %2779 }
0x1421   :  { %3856 = vrsqrt.f32 %v2793_v58  ;;  %v2788_v62 = vmul.f32 0.0078125, %v2782_v61  ;;  %v2787_v55 = vmul.f32 0.0078125, %v2780_v17 }
0x1423   :  { %v2792_v56 = vadd.f32 1e-05, %v2788_v62  ;;  %v2791_v59 = vadd.f32 1e-05, %v2787_v55 }
0x1425   :  { %3858 = vrsqrt.f32 %v2792_v56 }
0x1426   :  { %3860 = vrsqrt.f32 %v2791_v59  ;;  %v3871_v59 = vmov 0.0  }
0x142c   :  { %v3855_v60 = vpop.eup %3854 }
0x142d   :  { %v2802_v31 = vmul.f32 %v3855_v60, %v2774_v38  ;;  %v3011_v60 = vld [vmem:[%s4763_s4 + $0x1] sm:$0x1] }
0x142e   :  { %v3857_v43 = vpop.eup %3856 }
0x142f   :  { %v2806_v36 = vmul.f32 %v4169_v1, %v2802_v31  ;;  %v2801_v47 = vmul.f32 %v3857_v43, %v2773_v48  ;;  %v2838_v48 = vpop.permute.xlu1 %2837 }
0x1431   :  { %v2810_v26 = vadd.f32 %v4177_v5, %v2806_v36  ;;  %v2805_v33 = vmul.f32 %v2801_v47, %v4171_v2 }
0x1432   :  { %v3859_v46 = vpop.eup %3858 }
0x1433   :  { %v3861_v30 = vpop.eup %3860  ;;  %v2814_v41 = vmax.f32 %v2810_v26, 0.0  ;;  %v2809_v51 = vadd.f32 %v2805_v33, %v4179_v6  ;;  %v2800_v14 = vmul.f32 %v3859_v46, %v2772_v22  ;;  %v3289_v6 = vld [vmem:[%s4761_s2 + $0x128] sm:$0xff]  ;;  %v2833_v45 = vpop.permute.xlu1 %2832 }
0x1434   :  { %v2799_v42 = vmul.f32 %v3861_v30, %v2771_v50 }
0x1435   :  { %3748 = vmatprep.subr.mxu1 %v2814_v41  ;;  %v2813_v54 = vmax.f32 %v2809_v51, 0.0  ;;  %v2804_v44 = vmul.f32 %v4165_v63, %v2800_v14  ;;  %v3290_v63 = vld [vmem:[%s4761_s2 + $0x130] sm:$0xff] }
0x1436   :  { %3749 = vmatpush3.msra.mxu1 %v2814_v41  ;;  %v2803_v38 = vmul.f32 %v2799_v42, %v4167_v0  ;;  %v3291_v0 = vld [vmem:[%s4761_s2 + $0x138] sm:$0xff] }
0x1437   :  { %3750 = vmatprep.subr.mxu1 %v2813_v54  ;;  %v2808_v1 = vadd.f32 %v4173_v3, %v2804_v44  ;;  %v2843_v3 = vpop.permute.xlu0 %2842 }
0x1438   :  { %3751 = vmatpush3.msra.mxu1 %v2813_v54  ;;  %v2807_v2 = vadd.f32 %v2803_v38, %v4175_v4 }
0x1439   :  { %v2812_v5 = vmax.f32 %v2808_v1, 0.0 }
0x143a   :  { %v2811_v52 = vmax.f32 %v2807_v2, 0.0 }
0x143b   :  { %3752 = vmatprep.subr.mxu1 %v2812_v5  ;;  %v2828_v50 = vpop.permute.xlu0 %2827 }
0x143c   :  { %3753 = vmatpush3.msra.mxu1 %v2812_v5 }
0x143d   :  { %3754 = vmatprep.subr.mxu1 %v2811_v52 }
0x143e   :  { %3755 = vmatpush3.msra.mxu1 %v2811_v52 }
0x143f   :  { %3757 = vmatmul.mubr.msk.f32.vlgmr.msra.gmra.mxu1 %vm1109_vm2, %v3289_v6  ;;  %3762 = vmatprep.subr.mxu1 %v3871_v59 }
0x1440   :  { %3759 = vmatprep.mubr.msk.f32.mxu1 %vm1109_vm2, %v3290_v63 }
0x1443   :  { %3760 = vmatmul.mubr.msk.f32.gmra.mxu1 %vm1109_vm2, %v3291_v0 }
0x1444   :  { %3770 = vmatprep.mubr.msk.f32.mxu1 %vm3872_vm3, %v3871_v59 }
0x14ff   :  { %v3758_v4 = vpop.f32.mrf.mxu1 }
0x1500   :  { %v2929_v32 = vadd.f32 %v3758_v4, %v2833_v45 }
0x1501   :  { %v2923_v21 = vpop.f32.mrf.mxu1 }
0x1502   :  { %v2924_v19 = vadd.f32 %v2923_v21, %v2828_v50  ;;  %v2943_v27 = vadd.f32 %v2929_v32, %v4657_v39 }
0x1503   :  { %v3761_v28 = vpop.f32.mrf.mxu1 }
0x1504   :  { %v2939_v20 = vadd.f32 %v3761_v28, %v2843_v3  ;;  %v2942_v25 = vadd.f32 %v2924_v19, %v4653_v24 }
0x1505   :  { %v2933_v35 = vpop.f32.mrf.mxu1 }
0x1506   :  { %v2945_v22 = vadd.f32 %v2939_v20, %v4646_v49  ;;  %v2934_v16 = vadd.f32 %v2933_v35, %v2838_v48 }
0x1508   :  { %v2944_v37 = vadd.f32 %v2934_v16, %v4649_v23  ;;  %2960 = vadd.xlane.f32.xlu1 %v2945_v22 }
0x150a   :  { %2958 = vadd.xlane.f32.xlu0 %v2944_v37 }
0x150c   :  { %2954 = vadd.xlane.f32.xlu1 %v2942_v25 }
0x150e   :  { %2956 = vadd.xlane.f32.xlu0 %v2943_v27 }
0x1591   :  { %v2961_v40 = vpop.xlane.xlu1 %2960 }
0x1592   :  { %v2965_v53 = vmul.f32 0.0078125, %v2961_v40 }
0x1593   :  { %v2959_v15 = vpop.xlane.xlu0 %2958 }
0x1594   :  { %v2969_v29 = vsub.f32 %v2945_v22, %v2965_v53  ;;  %v2964_v34 = vmul.f32 0.0078125, %v2959_v15 }
0x1595   :  { %v2955_v57 = vpop.xlane.xlu1 %2954 }
0x1596   :  { %v2968_v49 = vsub.f32 %v2944_v37, %v2964_v34  ;;  %v2962_v58 = vmul.f32 0.0078125, %v2955_v57  ;;  %v2973_v61 = vmul.f32 %v2969_v29, %v2969_v29 }
0x1597   :  { %v2957_v17 = vpop.xlane.xlu0 %2956 }
0x1598   :  { %v2966_v62 = vsub.f32 %v2942_v25, %v2962_v58  ;;  %v2963_v23 = vmul.f32 0.0078125, %v2957_v17  ;;  %2980 = vadd.xlane.f32.xlu0 %v2973_v61  ;;  %v2972_v55 = vmul.f32 %v2968_v49, %v2968_v49 }
0x159a   :  { %v2967_v24 = vsub.f32 %v2943_v27, %v2963_v23  ;;  %2978 = vadd.xlane.f32.xlu1 %v2972_v55  ;;  %v2970_v39 = vmul.f32 %v2966_v62, %v2966_v62 }
0x159c   :  { %v2971_v56 = vmul.f32 %v2967_v24, %v2967_v24 }
0x159e   :  { %2976 = vadd.xlane.f32.xlu0 %v2971_v56  ;;  %2974 = vadd.xlane.f32.xlu1 %v2970_v39 }
0x15b4   :  { %3014 = vperm.xlu0 %3780, %v3011_v60  }
0x1621   :  { %v2981_v31 = vpop.xlane.xlu0 %2980 }
0x1622   :  { %v2985_v43 = vmul.f32 0.0078125, %v2981_v31 }
0x1623   :  { %v2979_v36 = vpop.xlane.xlu1 %2978 }
0x1624   :  { %v2989_v47 = vadd.f32 1e-05, %v2985_v43  ;;  %v2984_v26 = vmul.f32 0.0078125, %v2979_v36 }
0x1626   :  { %3862 = vrsqrt.f32 %v2989_v47  ;;  %v2988_v33 = vadd.f32 1e-05, %v2984_v26 }
0x1627   :  { %v2977_v46 = vpop.xlane.xlu0 %2976  ;;  %v2975_v30 = vpop.xlane.xlu1 %2974 }
0x1628   :  { %3864 = vrsqrt.f32 %v2988_v33  ;;  %v2983_v41 = vmul.f32 0.0078125, %v2977_v46  ;;  %v2982_v51 = vmul.f32 0.0078125, %v2975_v30 }
0x162a   :  { %v2987_v14 = vadd.f32 1e-05, %v2983_v41  ;;  %v2986_v42 = vadd.f32 1e-05, %v2982_v51 }
0x162c   :  { %3866 = vrsqrt.f32 %v2987_v14 }
0x162d   :  { %3868 = vrsqrt.f32 %v2986_v42 }
0x1633   :  { %v3863_v54 = vpop.eup %3862 }
0x1634   :  { %v2997_v44 = vmul.f32 %v3863_v54, %v2969_v29 }
0x1635   :  { %v3865_v38 = vpop.eup %3864 }
0x1636   :  { %v3001_v1 = vmul.f32 %v4185_v9, %v2997_v44  ;;  %v2996_v2 = vmul.f32 %v3865_v38, %v2968_v49 }
0x1638   :  { %v3005_v5 = vadd.f32 %v4193_v13, %v3001_v1  ;;  %v3000_v52 = vmul.f32 %v2996_v2, %v4187_v10 }
0x1639   :  { %v3867_v6 = vpop.eup %3866 }
0x163a   :  { %v3869_v63 = vpop.eup %3868  ;;  %v3009_v0 = vmax.f32 %v3005_v5, 0.0  ;;  %v3004_v3 = vadd.f32 %v3000_v52, %v4195_v18  ;;  %v2995_v4 = vmul.f32 %v3867_v6, %v2967_v24  ;;  %v3010_v18 = vld [vmem:[%s4763_s4] sm:$0x1] }
0x163b   :  { %v2994_v48 = vmul.f32 %v3869_v63, %v2966_v62 }
0x163c   :  { %3763 = vmatpush3.msra.mxu1 %v3009_v0  ;;  %v3008_v21 = vmax.f32 %v3004_v3, 0.0  ;;  %v2999_v28 = vmul.f32 %v4181_v7, %v2995_v4  ;;  %v3015_v7 = vpop.permute.xlu0 %3014 }
0x163d   :  { %3764 = vmatprep.subr.mxu1 %v3871_v59  ;;  %v2998_v20 = vmul.f32 %v2994_v48, %v4183_v8 }
0x163e   :  { %3765 = vmatpush3.msra.mxu1 %v3008_v21  ;;  %v3003_v9 = vadd.f32 %v4189_v11, %v2999_v28 }
0x163f   :  { %3766 = vmatprep.subr.mxu1 %v3871_v59  ;;  %v3002_v10 = vadd.f32 %v2998_v20, %v4191_v12 }
0x1640   :  { %v3007_v13 = vmax.f32 %v3003_v9, 0.0 }
0x1641   :  { %v3006_v50 = vmax.f32 %v3002_v10, 0.0 }
0x1642   :  { %3767 = vmatpush3.msra.mxu1 %v3007_v13 }
0x1643   :  { %3768 = vmatprep.subr.mxu1 %v3871_v59 }
0x1644   :  { %3769 = vmatpush3.msra.mxu1 %v3006_v50 }
0x1645   :  { %3771 = vmatmul.mubr.msk.f32.vlgmr.msra.gmra.mxu1 %vm1109_vm2, %v3010_v18 }
0x1705   :  { %v3086_v35 = vpop.f32.mrf.mxu1 }
0x1706   :  { %v3087_v8 = vadd.f32 %v3086_v35, %v3015_v7 }
0x1707   :  { %v3772_v19 = vpop.f32.mrf.mxu1 }
0x1708   :  { %3090 = vst [vmem:[%s4764_s5] sm:$0x1] %v3087_v8 }

</bundles_post_ra>
